<compile_context>
chip_gen: v5e
topology: v5e:2x2
jax: 0.10.0
libtpu: 0.0.40
codegen_flags: <defaults>
</compile_context>

<pallas_src>
import math
import numpy as np
import jax
import jax.numpy as jnp
from jax.experimental import pallas as pl
from jax.experimental.pallas import tpu as pltpu


_TB = 128                      # kernel-2 pixel sub-block (lane axis of the tri-matmul)
_NB_MAX = 128                  # kernel-2 sub-blocks per grid step (<= 16K pixels/step)
_T1_MAX = 64 * 1024            # kernel-1 pixels per grid step (upper bound)
_T1_GRAN = 1024                # kernel-1 tile granularity (>= 8 sublane rows of 128)
_VMEM_LIMIT = 32 * 1024 * 1024


def _round_up(x, m):
    return ((x + m - 1) // m) * m


def _softmax_key_kernel(logits_ref, labels_ref, cls_ref, key_ref, cnt_ref):
    """Softmax over C + packed Lovasz-error keys for one pixel tile.

    logits_ref: [1, C, t, 128] f32   natural [B, C, HW] layout, pixel-dense tile
    labels_ref: [1, t, 128]    i32   -1 marks padding
    cls_ref:    [C, 1]         i32   class indices 0..C-1 (constant input)
    key_ref:    [C, t, 128]    i32   negated packed keys  -((bits(err) << 1) | fg)
    cnt_ref:    [1, C, 1]      f32   per-tile foreground count per class
    """
    x = logits_ref[0]                                   # [C, t, 128]
    lbl = labels_ref[0]                                 # [t, 128]
    valid = lbl >= 0

    # Softmax over the leading class axis: elementwise VPU ops across C slices,
    # every vreg fully dense on (sublane, lane).
    m = jnp.max(x, axis=0)                              # [t, 128]
    e = jnp.exp(x - m)
    rs = pl.reciprocal(jnp.sum(e, axis=0), approx=False)
    p = e * rs                                          # [C, t, 128]

    cls = cls_ref[...][:, :, None]                      # [C, 1, 1]
    fg = lbl == cls                                     # [C, t, 128] one-hot bool
    fgf = fg.astype(jnp.float32)
    err = jnp.where(valid, jnp.abs(fgf - p), 0.0)       # padded pixels -> 0

    # err in [0, 1] -> sign bit and bit30 are 0, so (bits << 1) preserves the
    # float ordering and leaves bit0 free for fg.  Negate so a plain ascending
    # XLA sort is a descending sort in (err, fg).
    key = (pltpu.bitcast(err, jnp.int32) << 1) | fg.astype(jnp.int32)
    key_ref[...] = -key

    # Per-tile per-class foreground counts (finished with a tiny XLA reduce).
    cnt_ref[0] = jnp.sum(jnp.sum(fgf, axis=2), axis=1, keepdims=True)   # [C, 1]


def _lovasz_blocked_kernel(gts_ref, tri_ref, ls_ref, pos_ref, key_ref,
                           out_ref, carry_ref, loss_ref):
    """Blocked Lovasz extension over the (descending) sorted packed keys.

    gts_ref:   [C, 1]       f32  total foreground count per class
    tri_ref:   [TB, TB]     bf16 upper-triangular (incl. diagonal) ones
    ls_ref:    [NB, NB]     f32  strictly-upper-triangular ones (sub-block prefix)
    pos_ref:   [NB, TB]     f32  local 0-based positions j*TB + i
    key_ref:   [C, NB, TB]  i32  sorted negated packed keys for this tile
    out_ref:   [1, 1]       f32  final loss
    carry_ref: [C, 1]       f32  scratch: fg count of previous tiles
    loss_ref:  [C, 1]       f32  scratch: per-class partial dot(errors, grad)
    """
    t = pl.program_id(0)

    @pl.when(t == 0)
    def _init():
        carry_ref[...] = jnp.zeros_like(carry_ref)
        loss_ref[...] = jnp.zeros_like(loss_ref)

    k = -key_ref[...]                                   # [C, NB, TB] packed keys
    fgf = (k & 1).astype(jnp.float32)                   # sorted fg
    err3 = pltpu.bitcast(k >> 1, jnp.float32)           # sorted |fg - p| (exact)
    C, NB, TB = fgf.shape

    # Intra-sub-block inclusive cumsum of fg: one bf16 triangular matmul with the
    # M dim packed to C*NB rows (f32 accumulation -> exact for 0/1 operands).
    cum3 = jnp.dot(fgf.astype(jnp.bfloat16).reshape(C * NB, TB), tri_ref[...],
                   preferred_element_type=jnp.float32).reshape(C, NB, TB)
    bsum = cum3[:, :, TB - 1]                           # [C, NB] sub-block totals
    excl = jnp.dot(bsum, ls_ref[...],
                   preferred_element_type=jnp.float32)  # exclusive sub-block prefix
    offs = excl + carry_ref[...]                        # [C, NB] + [C, 1]
    cum = cum3 + offs[:, :, None]                       # global inclusive fg cumsum

    gts = gts_ref[...][:, :, None]                      # [C, 1, 1]
    base = (t * (NB * TB)).astype(jnp.float32)
    pos = pos_ref[...][None, :, :] + base               # global 0-based position

    # lovasz_grad without the near-cancelling jac[i] - jac[i-1] difference:
    #   union = gts + (i+1) - cum[i]
    #   grad  = 1 / union                           if fg[i] == 1
    #         = (gts - cum[i]) / (union*(union-1))  if fg[i] == 0
    # The max(union-1, 1) clamp only triggers for gts == 0 (absent class) at
    # global position 0, where the numerator is 0 anyway -> never NaN/Inf.
    union = gts + (pos + 1.0) - cum
    um1 = jnp.maximum(union - 1.0, 1.0)
    r = pl.reciprocal(union * um1, approx=False)        # one reciprocal per element
    grad = jnp.where(fgf > 0.5, um1 * r, (gts - cum) * r)

    loss_ref[...] += jnp.sum(jnp.sum(err3 * grad, axis=2), axis=1, keepdims=True)
    carry_ref[...] += jnp.sum(bsum, axis=1, keepdims=True)

    @pl.when(t == pl.num_programs(0) - 1)
    def _finalize():
        g = gts_ref[...]                                # [C, 1]
        present = g > 0.0                               # classes == 'present'
        total = jnp.sum(jnp.where(present, loss_ref[...], 0.0), keepdims=True)
        n_present = jnp.sum(present.astype(jnp.float32), keepdims=True)
        out_ref[...] = jnp.where(n_present > 0.0,
                                 total / jnp.maximum(n_present, 1.0),
                                 jnp.zeros_like(total))


@jax.jit
def lovasz_softmax_loss(output, target):
    """Forward of LovaszSoftmax (classes='present', per_image=False, ignore=None)."""
    B, C, H, W = output.shape
    HW = H * W

    # ---- kernel-1 tiling: large pixel tiles, pixels dense on (sublane, lane) ----
    vmem_cap = (20 * 1024 * 1024) // (32 * C + 8)        # rough per-pixel VMEM budget
    t1 = max(_T1_GRAN, (min(_T1_MAX, vmem_cap) // _T1_GRAN) * _T1_GRAN)
    T1 = min(t1, _round_up(HW, _T1_GRAN))                # pixels per grid step
    HWpad = _round_up(HW, T1)
    NT = HWpad // T1
    tq = T1 // 128                                       # sublane rows per tile

    logits = output.reshape(B, C, HW)
    labels = target.reshape(B, HW).astype(jnp.int32)
    if HWpad != HW:
        logits = jnp.pad(logits, ((0, 0), (0, 0), (0, HWpad - HW)))
        labels = jnp.pad(labels, ((0, 0), (0, HWpad - HW)), constant_values=-1)
    logits = logits.reshape(B, C, HWpad // 128, 128)     # free row-major reshapes
    labels = labels.reshape(B, HWpad // 128, 128)
    cls_arr = jnp.arange(C, dtype=jnp.int32).reshape(C, 1)

    Pk = B * HWpad                                       # padded pixel count

    neg_keys, cnt_part = pl.pallas_call(
        _softmax_key_kernel,
        grid=(B, NT),
        in_specs=[pl.BlockSpec((1, C, tq, 128), lambda b, i: (b, 0, i, 0)),
                  pl.BlockSpec((1, tq, 128), lambda b, i: (b, i, 0)),
                  pl.BlockSpec((C, 1), lambda b, i: (0, 0))],
        out_specs=(pl.BlockSpec((C, tq, 128), lambda b, i: (0, b * NT + i, 0)),
                   pl.BlockSpec((1, C, 1), lambda b, i: (b * NT + i, 0, 0))),
        out_shape=(jax.ShapeDtypeStruct((C, Pk // 128, 128), jnp.int32),
                   jax.ShapeDtypeStruct((B * NT, C, 1), jnp.float32)),
        compiler_params=pltpu.CompilerParams(
            dimension_semantics=("parallel", "parallel"),
            vmem_limit_bytes=_VMEM_LIMIT),
    )(logits, labels, cls_arr)

    # Tiny XLA epilogue: finish the per-class foreground totals.
    gts = jnp.sum(cnt_part, axis=0)                      # [C, 1]

    # TODO(synk): the per-class descending sort (torch.sort) has no Pallas TPU
    # primitive; kept as XLA glue.  One ascending sort of the negated packed
    # int32 keys replaces argsort + two gathers (tie order differs from torch's
    # stable sort, which is provably loss-neutral).
    keys_sorted = jnp.sort(neg_keys.reshape(C, Pk), axis=1)

    # ---- kernel-2 tiling: NB sub-blocks of TB pixels per carried grid step ----
    npb = Pk // _TB
    NB = math.gcd(npb, _NB_MAX)                          # >= 8 since Pk % 1024 == 0
    keys3 = keys_sorted.reshape(C, npb, _TB)

    # Hoisted constants (built once at trace time, resident across grid steps).
    i_ = np.arange(_TB)
    j_ = np.arange(NB)
    tri = jnp.asarray((i_[:, None] <= i_[None, :]).astype(np.float32),
                      dtype=jnp.bfloat16)                                # [TB, TB]
    ls = jnp.asarray((j_[:, None] < j_[None, :]).astype(np.float32))     # [NB, NB]
    pos_local = jnp.asarray((j_[:, None] * _TB + i_[None, :]).astype(np.float32))

    loss = pl.pallas_call(
        _lovasz_blocked_kernel,
        grid=(npb // NB,),
        in_specs=[pl.BlockSpec((C, 1), lambda t: (0, 0)),
                  pl.BlockSpec((_TB, _TB), lambda t: (0, 0)),
                  pl.BlockSpec((NB, NB), lambda t: (0, 0)),
                  pl.BlockSpec((NB, _TB), lambda t: (0, 0)),
                  pl.BlockSpec((C, NB, _TB), lambda t: (0, t, 0))],
        out_specs=pl.BlockSpec((1, 1), lambda t: (0, 0)),
        out_shape=jax.ShapeDtypeStruct((1, 1), jnp.float32),
        scratch_shapes=[pltpu.VMEM((C, 1), jnp.float32),     # fg carry
                        pltpu.VMEM((C, 1), jnp.float32)],    # per-class loss
        compiler_params=pltpu.CompilerParams(
            dimension_semantics=("arbitrary",),
            vmem_limit_bytes=_VMEM_LIMIT),
    )(gts, tri, ls, pos_local, keys3)
    return loss[0, 0]


def _reference_loss(output, target):
    """Pure numpy re-implementation of the PyTorch forward for verification."""
    output = np.asarray(output, np.float32)
    target = np.asarray(target)
    B, C, H, W = output.shape
    x = output - output.max(axis=1, keepdims=True)
    e = np.exp(x)
    p = e / e.sum(axis=1, keepdims=True)
    probas = np.transpose(p, (0, 2, 3, 1)).reshape(-1, C)
    labels = target.reshape(-1)
    losses = []
    for c in range(C):
        fg = (labels == c).astype(np.float32)
        if fg.sum() == 0:
            continue
        errors = np.abs(fg - probas[:, c])
        perm = np.argsort(-errors, kind="stable")
        es, fs = errors[perm], fg[perm]
        gts = fs.sum()
        inter = gts - np.cumsum(fs)
        union = gts + np.cumsum(1.0 - fs)
        jac = 1.0 - inter / union
        jac[1:] = jac[1:] - jac[:-1]
        losses.append(float(np.dot(es, jac)))
    return float(np.mean(losses)) if losses else 0.0


if __name__ == "__main__":
    key = jax.random.PRNGKey(0)
    k1, k2 = jax.random.split(key)
    B, C, H, W = 2, 4, 16, 16
    output = jax.random.normal(k1, (B, C, H, W), dtype=jnp.float32)
    target = jax.random.randint(k2, (B, H, W), 0, C, dtype=jnp.int32)

    loss = lovasz_softmax_loss(output, target)
    loss = jax.block_until_ready(loss)

    ref = _reference_loss(output, target)
    assert np.isfinite(float(loss))
    assert abs(float(loss) - ref) < 1e-3, (float(loss), ref)
    print("KERNEL_OK")
</pallas_src>

<mosaic_0001>
module attributes {stable_mosaic.version = 11 : i64} {
  func.func @_softmax_key_kernel(%arg0: i32, %arg1: i32, %arg2: memref<1x4x8x128xf32, #tpu.memory_space<vmem>>, %arg3: memref<1x8x128xi32, #tpu.memory_space<vmem>>, %arg4: memref<4x1xi32, #tpu.memory_space<vmem>>, %arg5: memref<4x8x128xi32, #tpu.memory_space<vmem>>, %arg6: memref<1x4x1xf32, #tpu.memory_space<vmem>>) attributes {dimension_semantics = [#tpu.dimension_semantics<parallel>, #tpu.dimension_semantics<parallel>], iteration_bounds = array<i64: 2, 1>, scalar_prefetch = 0 : i64, scratch_operands = 0 : i64, tpu.core_type = #tpu.core_type<tc>, window_params = [{transform_indices = @transform_0, window_bounds = array<i64: 1, 4, 8, 128>}, {transform_indices = @transform_1, window_bounds = array<i64: 1, 8, 128>}, {pipeline_mode = #tpu.pipeline_mode<synchronous>, transform_indices = @transform_2, window_bounds = array<i64: 4, 1>}, {transform_indices = @transform_3, window_bounds = array<i64: 4, 8, 128>}, {transform_indices = @transform_4, window_bounds = array<i64: 1, 4, 1>}]} {
    %c0 = arith.constant 0 : index
    %c0_0 = arith.constant 0 : index
    %c0_1 = arith.constant 0 : index
    %c0_2 = arith.constant 0 : index
    %0 = vector.load %arg2[%c0, %c0_0, %c0_1, %c0_2] : memref<1x4x8x128xf32, #tpu.memory_space<vmem>>, vector<1x4x8x128xf32>
    %1 = vector.shape_cast %0 : vector<1x4x8x128xf32> to vector<4x8x128xf32>
    %c0_3 = arith.constant 0 : index
    %c0_4 = arith.constant 0 : index
    %c0_5 = arith.constant 0 : index
    %2 = vector.load %arg3[%c0_3, %c0_4, %c0_5] : memref<1x8x128xi32, #tpu.memory_space<vmem>>, vector<1x8x128xi32>
    %3 = vector.shape_cast %2 : vector<1x8x128xi32> to vector<8x128xi32>
    %c0_i32 = arith.constant 0 : i32
    %4 = vector.broadcast %c0_i32 : i32 to vector<8x128xi32>
    %5 = arith.cmpi sge, %3, %4 : vector<8x128xi32>
    %cst = arith.constant dense<0xFF800000> : vector<8x128xf32>
    %6 = vector.multi_reduction <maximumf>, %1, %cst [0] : vector<4x8x128xf32> to vector<8x128xf32>
    %7 = vector.shape_cast %6 : vector<8x128xf32> to vector<1x8x128xf32>
    %8 = vector.broadcast %7 : vector<1x8x128xf32> to vector<4x8x128xf32>
    %9 = arith.subf %1, %8 : vector<4x8x128xf32>
    %10 = math.exp %9 : vector<4x8x128xf32>
    %cst_6 = arith.constant dense<0.000000e+00> : vector<8x128xf32>
    %11 = vector.multi_reduction <add>, %10, %cst_6 [0] : vector<4x8x128xf32> to vector<8x128xf32>
    %12 = tpu.reciprocal %11 : vector<8x128xf32> -> vector<8x128xf32>
    %13 = vector.shape_cast %12 : vector<8x128xf32> to vector<1x8x128xf32>
    %14 = vector.broadcast %13 : vector<1x8x128xf32> to vector<4x8x128xf32>
    %15 = arith.mulf %10, %14 : vector<4x8x128xf32>
    %c0_7 = arith.constant 0 : index
    %c0_8 = arith.constant 0 : index
    %16 = vector.load %arg4[%c0_7, %c0_8] : memref<4x1xi32, #tpu.memory_space<vmem>>, vector<4x1xi32>
    %17 = vector.shape_cast %16 : vector<4x1xi32> to vector<4x1x1xi32>
    %18 = vector.shape_cast %3 : vector<8x128xi32> to vector<1x8x128xi32>
    %19 = vector.broadcast %18 : vector<1x8x128xi32> to vector<4x8x128xi32>
    %20 = vector.broadcast %17 : vector<4x1x1xi32> to vector<4x8x128xi32>
    %21 = arith.cmpi eq, %19, %20 : vector<4x8x128xi32>
    %22 = arith.extui %21 : vector<4x8x128xi1> to vector<4x8x128xi32>
    %23 = arith.sitofp %22 : vector<4x8x128xi32> to vector<4x8x128xf32>
    %24 = arith.subf %23, %15 : vector<4x8x128xf32>
    %25 = math.absf %24 : vector<4x8x128xf32>
    %cst_9 = arith.constant 0.000000e+00 : f32
    %26 = vector.shape_cast %5 : vector<8x128xi1> to vector<1x8x128xi1>
    %27 = vector.broadcast %26 : vector<1x8x128xi1> to vector<4x8x128xi1>
    %28 = vector.broadcast %cst_9 : f32 to vector<4x8x128xf32>
    %29 = arith.select %27, %25, %28 : vector<4x8x128xi1>, vector<4x8x128xf32>
    %30 = tpu.bitcast %29 : vector<4x8x128xf32> -> vector<4x8x128xi32>
    %c1_i32 = arith.constant 1 : i32
    %31 = vector.broadcast %c1_i32 : i32 to vector<4x8x128xi32>
    %32 = arith.shli %30, %31 : vector<4x8x128xi32>
    %33 = arith.extui %21 : vector<4x8x128xi1> to vector<4x8x128xi32>
    %34 = arith.ori %32, %33 : vector<4x8x128xi32>
    %c0_i32_10 = arith.constant 0 : i32
    %35 = vector.broadcast %c0_i32_10 : i32 to vector<4x8x128xi32>
    %36 = arith.subi %35, %34 : vector<4x8x128xi32>
    %c0_11 = arith.constant 0 : index
    %c0_12 = arith.constant 0 : index
    %c0_13 = arith.constant 0 : index
    %37 = vector.load %arg5[%c0_11, %c0_12, %c0_13] : memref<4x8x128xi32, #tpu.memory_space<vmem>>, vector<4x8x128xi32>
    tpu.vector_store %arg5[%c0_11, %c0_12, %c0_13], %36 {strides = array<i32>} : memref<4x8x128xi32, #tpu.memory_space<vmem>>, vector<4x8x128xi32>,
    %cst_14 = arith.constant dense<0.000000e+00> : vector<4x8xf32>
    %38 = vector.multi_reduction <add>, %23, %cst_14 [2] : vector<4x8x128xf32> to vector<4x8xf32>
    %cst_15 = arith.constant dense<0.000000e+00> : vector<4xf32>
    %39 = vector.multi_reduction <add>, %38, %cst_15 [1] : vector<4x8xf32> to vector<4xf32>
    %40 = vector.shape_cast %39 : vector<4xf32> to vector<4x1xf32>
    %c0_16 = arith.constant 0 : index
    %c0_17 = arith.constant 0 : index
    %c0_18 = arith.constant 0 : index
    %41 = vector.load %arg6[%c0_16, %c0_17, %c0_18] : memref<1x4x1xf32, #tpu.memory_space<vmem>>, vector<1x4x1xf32>
    %42 = vector.shape_cast %41 : vector<1x4x1xf32> to vector<4x1xf32>
    %43 = vector.shape_cast %40 : vector<4x1xf32> to vector<1x4x1xf32>
    tpu.vector_store %arg6[%c0_16, %c0_17, %c0_18], %43 {strides = array<i32>} : memref<1x4x1xf32, #tpu.memory_space<vmem>>, vector<1x4x1xf32>,
    return
  }
  func.func @transform_0(%arg0: i32, %arg1: i32) -> (i32, i32, i32, i32) {
    %c0_i32 = arith.constant 0 : i32
    %c0_i32_0 = arith.constant 0 : i32
    %c0_i32_1 = arith.constant 0 : i32
    return %arg0, %c0_i32, %arg1, %c0_i32_0 : i32, i32, i32, i32
  }
  func.func @transform_1(%arg0: i32, %arg1: i32) -> (i32, i32, i32) {
    %c0_i32 = arith.constant 0 : i32
    %c0_i32_0 = arith.constant 0 : i32
    return %arg0, %arg1, %c0_i32 : i32, i32, i32
  }
  func.func @transform_2(%arg0: i32, %arg1: i32) -> (i32, i32) {
    %c0_i32 = arith.constant 0 : i32
    %c0_i32_0 = arith.constant 0 : i32
    %c0_i32_1 = arith.constant 0 : i32
    return %c0_i32, %c0_i32_0 : i32, i32
  }
  func.func @transform_3(%arg0: i32, %arg1: i32) -> (i32, i32, i32) {
    %c1_i32 = arith.constant 1 : i32
    %0 = arith.muli %arg0, %c1_i32 : i32
    %1 = arith.addi %0, %arg1 : i32
    %c0_i32 = arith.constant 0 : i32
    %c0_i32_0 = arith.constant 0 : i32
    %c0_i32_1 = arith.constant 0 : i32
    return %c0_i32, %1, %c0_i32_0 : i32, i32, i32
  }
  func.func @transform_4(%arg0: i32, %arg1: i32) -> (i32, i32, i32) {
    %c1_i32 = arith.constant 1 : i32
    %0 = arith.muli %arg0, %c1_i32 : i32
    %1 = arith.addi %0, %arg1 : i32
    %c0_i32 = arith.constant 0 : i32
    %c0_i32_0 = arith.constant 0 : i32
    %c0_i32_1 = arith.constant 0 : i32
    return %1, %c0_i32, %c0_i32_0 : i32, i32, i32
  }
}

module attributes {stable_mosaic.version = 11 : i64} {
  func.func @_lovasz_blocked_kernel(%arg0: i32, %arg1: memref<4x1xf32, #tpu.memory_space<vmem>>, %arg2: memref<128x128xbf16, #tpu.memory_space<vmem>>, %arg3: memref<16x16xf32, #tpu.memory_space<vmem>>, %arg4: memref<16x128xf32, #tpu.memory_space<vmem>>, %arg5: memref<4x16x128xi32, #tpu.memory_space<vmem>>, %arg6: memref<1x1xf32, #tpu.memory_space<vmem>>, %arg7: memref<4x1xf32, #tpu.memory_space<vmem>>, %arg8: memref<4x1xf32, #tpu.memory_space<vmem>>) attributes {dimension_semantics = [#tpu.dimension_semantics<arbitrary>], iteration_bounds = array<i64: 1>, scalar_prefetch = 0 : i64, scratch_operands = 2 : i64, tpu.core_type = #tpu.core_type<tc>, window_params = [{pipeline_mode = #tpu.pipeline_mode<synchronous>, transform_indices = @transform_0, window_bounds = array<i64: 4, 1>}, {pipeline_mode = #tpu.pipeline_mode<synchronous>, transform_indices = @transform_1, window_bounds = array<i64: 128, 128>}, {pipeline_mode = #tpu.pipeline_mode<synchronous>, transform_indices = @transform_2, window_bounds = array<i64: 16, 16>}, {pipeline_mode = #tpu.pipeline_mode<synchronous>, transform_indices = @transform_3, window_bounds = array<i64: 16, 128>}, {transform_indices = @transform_4, window_bounds = array<i64: 4, 16, 128>}, {pipeline_mode = #tpu.pipeline_mode<synchronous>, transform_indices = @transform_5, window_bounds = array<i64: 1, 1>}]} {
    %c0_i32 = arith.constant 0 : i32
    %0 = arith.cmpi eq, %arg0, %c0_i32 : i32
    %1 = arith.extui %0 : i1 to i32
    %c0_i32_0 = arith.constant 0 : i32
    %2 = arith.cmpi ne, %1, %c0_i32_0 : i32
    scf.if %2 {
      %cst_33 = arith.constant 0.000000e+00 : f32
      %69 = vector.broadcast %cst_33 : f32 to vector<4x1xf32>
      %c0_34 = arith.constant 0 : index
      %c0_35 = arith.constant 0 : index
      %70 = vector.load %arg7[%c0_34, %c0_35] : memref<4x1xf32, #tpu.memory_space<vmem>>, vector<4x1xf32>
      tpu.vector_store %arg7[%c0_34, %c0_35], %69 {strides = array<i32>} : memref<4x1xf32, #tpu.memory_space<vmem>>, vector<4x1xf32>,
      %cst_36 = arith.constant 0.000000e+00 : f32
      %71 = vector.broadcast %cst_36 : f32 to vector<4x1xf32>
      %c0_37 = arith.constant 0 : index
      %c0_38 = arith.constant 0 : index
      %72 = vector.load %arg8[%c0_37, %c0_38] : memref<4x1xf32, #tpu.memory_space<vmem>>, vector<4x1xf32>
      tpu.vector_store %arg8[%c0_37, %c0_38], %71 {strides = array<i32>} : memref<4x1xf32, #tpu.memory_space<vmem>>, vector<4x1xf32>,
    } else {
    }
    %c0 = arith.constant 0 : index
    %c0_1 = arith.constant 0 : index
    %c0_2 = arith.constant 0 : index
    %3 = vector.load %arg5[%c0, %c0_1, %c0_2] : memref<4x16x128xi32, #tpu.memory_space<vmem>>, vector<4x16x128xi32>
    %c0_i32_3 = arith.constant 0 : i32
    %4 = vector.broadcast %c0_i32_3 : i32 to vector<4x16x128xi32>
    %5 = arith.subi %4, %3 : vector<4x16x128xi32>
    %c1_i32 = arith.constant 1 : i32
    %6 = vector.broadcast %c1_i32 : i32 to vector<4x16x128xi32>
    %7 = arith.andi %5, %6 : vector<4x16x128xi32>
    %8 = arith.sitofp %7 : vector<4x16x128xi32> to vector<4x16x128xf32>
    %c1_i32_4 = arith.constant 1 : i32
    %9 = vector.broadcast %c1_i32_4 : i32 to vector<4x16x128xi32>
    %10 = arith.shrsi %5, %9 : vector<4x16x128xi32>
    %11 = tpu.bitcast %10 : vector<4x16x128xi32> -> vector<4x16x128xf32>
    %12 = arith.truncf %8 : vector<4x16x128xf32> to vector<4x16x128xbf16>
    %13 = vector.shape_cast %12 : vector<4x16x128xbf16> to vector<64x128xbf16>
    %c0_5 = arith.constant 0 : index
    %c0_6 = arith.constant 0 : index
    %14 = vector.load %arg2[%c0_5, %c0_6] : memref<128x128xbf16, #tpu.memory_space<vmem>>, vector<128x128xbf16>
    %cst = arith.constant dense<0.000000e+00> : vector<64x128xf32>
    %15 = tpu.matmul %13, %14, %cst {dimension_numbers = #tpu.dot_dimension_numbers<[1], [0], [0], [1], [0, 0, 1, 1], [], []>} : vector<64x128xbf16>, vector<128x128xbf16>, vector<64x128xf32> -> vector<64x128xf32>
    %16 = vector.shape_cast %15 : vector<64x128xf32> to vector<4x16x128xf32>
    %17 = vector.extract_strided_slice %16 {offsets = [0, 0, 127], sizes = [4, 16, 1], strides = [1, 1, 1]} : vector<4x16x128xf32> to vector<4x16x1xf32>
    %18 = vector.shape_cast %17 : vector<4x16x1xf32> to vector<4x16xf32>
    %c0_7 = arith.constant 0 : index
    %c0_8 = arith.constant 0 : index
    %19 = vector.load %arg3[%c0_7, %c0_8] : memref<16x16xf32, #tpu.memory_space<vmem>>, vector<16x16xf32>
    %cst_9 = arith.constant dense<0.000000e+00> : vector<4x16xf32>
    %20 = tpu.matmul %18, %19, %cst_9 {dimension_numbers = #tpu.dot_dimension_numbers<[1], [0], [0], [1], [0, 0, 1, 1], [], []>} : vector<4x16xf32>, vector<16x16xf32>, vector<4x16xf32> -> vector<4x16xf32>
    %c0_10 = arith.constant 0 : index
    %c0_11 = arith.constant 0 : index
    %21 = vector.load %arg7[%c0_10, %c0_11] : memref<4x1xf32, #tpu.memory_space<vmem>>, vector<4x1xf32>
    %22 = vector.broadcast %21 : vector<4x1xf32> to vector<4x16xf32>
    %23 = arith.addf %20, %22 : vector<4x16xf32>
    %24 = vector.shape_cast %23 : vector<4x16xf32> to vector<4x16x1xf32>
    %25 = vector.broadcast %24 : vector<4x16x1xf32> to vector<4x16x128xf32>
    %26 = arith.addf %16, %25 : vector<4x16x128xf32>
    %c0_12 = arith.constant 0 : index
    %c0_13 = arith.constant 0 : index
    %27 = vector.load %arg1[%c0_12, %c0_13] : memref<4x1xf32, #tpu.memory_space<vmem>>, vector<4x1xf32>
    %28 = vector.shape_cast %27 : vector<4x1xf32> to vector<4x1x1xf32>
    %c2048_i32 = arith.constant 2048 : i32
    %29 = arith.muli %arg0, %c2048_i32 : i32
    %30 = arith.sitofp %29 : i32 to f32
    %c0_14 = arith.constant 0 : index
    %c0_15 = arith.constant 0 : index
    %31 = vector.load %arg4[%c0_14, %c0_15] : memref<16x128xf32, #tpu.memory_space<vmem>>, vector<16x128xf32>
    %32 = vector.shape_cast %31 : vector<16x128xf32> to vector<1x16x128xf32>
    %33 = vector.broadcast %30 : f32 to vector<1x16x128xf32>
    %34 = arith.addf %32, %33 : vector<1x16x128xf32>
    %cst_16 = arith.constant 1.000000e+00 : f32
    %35 = vector.broadcast %cst_16 : f32 to vector<1x16x128xf32>
    %36 = arith.addf %34, %35 : vector<1x16x128xf32>
    %37 = vector.broadcast %28 : vector<4x1x1xf32> to vector<4x16x128xf32>
    %38 = vector.broadcast %36 : vector<1x16x128xf32> to vector<4x16x128xf32>
    %39 = arith.addf %37, %38 : vector<4x16x128xf32>
    %40 = arith.subf %39, %26 : vector<4x16x128xf32>
    %cst_17 = arith.constant 1.000000e+00 : f32
    %41 = vector.broadcast %cst_17 : f32 to vector<4x16x128xf32>
    %42 = arith.subf %40, %41 : vector<4x16x128xf32>
    %cst_18 = arith.constant 1.000000e+00 : f32
    %43 = vector.broadcast %cst_18 : f32 to vector<4x16x128xf32>
    %44 = arith.maximumf %42, %43 : vector<4x16x128xf32>
    %45 = arith.mulf %40, %44 : vector<4x16x128xf32>
    %46 = tpu.reciprocal %45 : vector<4x16x128xf32> -> vector<4x16x128xf32>
    %cst_19 = arith.constant 5.000000e-01 : f32
    %47 = vector.broadcast %cst_19 : f32 to vector<4x16x128xf32>
    %48 = arith.cmpf ogt, %8, %47 : vector<4x16x128xf32>
    %49 = arith.mulf %44, %46 : vector<4x16x128xf32>
    %50 = vector.broadcast %28 : vector<4x1x1xf32> to vector<4x16x128xf32>
    %51 = arith.subf %50, %26 : vector<4x16x128xf32>
    %52 = arith.mulf %51, %46 : vector<4x16x128xf32>
    %53 = arith.select %48, %49, %52 : vector<4x16x128xi1>, vector<4x16x128xf32>
    %c0_20 = arith.constant 0 : index
    %c0_21 = arith.constant 0 : index
    %54 = vector.load %arg8[%c0_20, %c0_21] : memref<4x1xf32, #tpu.memory_space<vmem>>, vector<4x1xf32>
    %55 = arith.mulf %11, %53 : vector<4x16x128xf32>
    %cst_22 = arith.constant dense<0.000000e+00> : vector<4x16xf32>
    %56 = vector.multi_reduction <add>, %55, %cst_22 [2] : vector<4x16x128xf32> to vector<4x16xf32>
    %cst_23 = arith.constant dense<0.000000e+00> : vector<4xf32>
    %57 = vector.multi_reduction <add>, %56, %cst_23 [1] : vector<4x16xf32> to vector<4xf32>
    %58 = vector.shape_cast %57 : vector<4xf32> to vector<4x1xf32>
    %59 = arith.addf %54, %58 : vector<4x1xf32>
    %c0_24 = arith.constant 0 : index
    %c0_25 = arith.constant 0 : index
    %60 = vector.load %arg8[%c0_24, %c0_25] : memref<4x1xf32, #tpu.memory_space<vmem>>, vector<4x1xf32>
    tpu.vector_store %arg8[%c0_24, %c0_25], %59 {strides = array<i32>} : memref<4x1xf32, #tpu.memory_space<vmem>>, vector<4x1xf32>,
    %c0_26 = arith.constant 0 : index
    %c0_27 = arith.constant 0 : index
    %61 = vector.load %arg7[%c0_26, %c0_27] : memref<4x1xf32, #tpu.memory_space<vmem>>, vector<4x1xf32>
    %cst_28 = arith.constant dense<0.000000e+00> : vector<4xf32>
    %62 = vector.multi_reduction <add>, %18, %cst_28 [1] : vector<4x16xf32> to vector<4xf32>
    %63 = vector.shape_cast %62 : vector<4xf32> to vector<4x1xf32>
    %64 = arith.addf %61, %63 : vector<4x1xf32>
    %c0_29 = arith.constant 0 : index
    %c0_30 = arith.constant 0 : index
    %65 = vector.load %arg7[%c0_29, %c0_30] : memref<4x1xf32, #tpu.memory_space<vmem>>, vector<4x1xf32>
    tpu.vector_store %arg7[%c0_29, %c0_30], %64 {strides = array<i32>} : memref<4x1xf32, #tpu.memory_space<vmem>>, vector<4x1xf32>,
    %c0_i32_31 = arith.constant 0 : i32
    %66 = arith.cmpi eq, %arg0, %c0_i32_31 : i32
    %67 = arith.extui %66 : i1 to i32
    %c0_i32_32 = arith.constant 0 : i32
    %68 = arith.cmpi ne, %67, %c0_i32_32 : i32
    scf.if %68 {
      %c0_33 = arith.constant 0 : index
      %c0_34 = arith.constant 0 : index
      %69 = vector.load %arg1[%c0_33, %c0_34] : memref<4x1xf32, #tpu.memory_space<vmem>>, vector<4x1xf32>
      %cst_35 = arith.constant 0.000000e+00 : f32
      %70 = vector.broadcast %cst_35 : f32 to vector<4x1xf32>
      %71 = arith.cmpf ogt, %69, %70 : vector<4x1xf32>
      %c0_36 = arith.constant 0 : index
      %c0_37 = arith.constant 0 : index
      %72 = vector.load %arg8[%c0_36, %c0_37] : memref<4x1xf32, #tpu.memory_space<vmem>>, vector<4x1xf32>
      %cst_38 = arith.constant 0.000000e+00 : f32
      %73 = vector.broadcast %cst_38 : f32 to vector<4x1xf32>
      %74 = arith.select %71, %72, %73 : vector<4x1xi1>, vector<4x1xf32>
      %75 = vector.shape_cast %74 : vector<4x1xf32> to vector<1x4x1xf32>
      %cst_39 = arith.constant dense<0.000000e+00> : vector<1xf32>
      %76 = vector.multi_reduction <add>, %75, %cst_39 [1, 2] : vector<1x4x1xf32> to vector<1xf32>
      %77 = vector.shape_cast %76 : vector<1xf32> to vector<1x1x1xf32>
      %78 = vector.extract %77[0, 0, 0] : f32 from vector<1x1x1xf32>
      %79 = vector.broadcast %78 : f32 to vector<1x1xf32>
      %80 = arith.extui %71 : vector<4x1xi1> to vector<4x1xi32>
      %81 = arith.sitofp %80 : vector<4x1xi32> to vector<4x1xf32>
      %82 = vector.shape_cast %81 : vector<4x1xf32> to vector<1x4x1xf32>
      %cst_40 = arith.constant dense<0.000000e+00> : vector<1xf32>
      %83 = vector.multi_reduction <add>, %82, %cst_40 [1, 2] : vector<1x4x1xf32> to vector<1xf32>
      %84 = vector.shape_cast %83 : vector<1xf32> to vector<1x1x1xf32>
      %85 = vector.extract %84[0, 0, 0] : f32 from vector<1x1x1xf32>
      %86 = vector.broadcast %85 : f32 to vector<1x1xf32>
      %cst_41 = arith.constant 0.000000e+00 : f32
      %87 = vector.broadcast %cst_41 : f32 to vector<1x1xf32>
      %88 = arith.cmpf ogt, %86, %87 : vector<1x1xf32>
      %cst_42 = arith.constant 1.000000e+00 : f32
      %89 = vector.broadcast %cst_42 : f32 to vector<1x1xf32>
      %90 = arith.maximumf %86, %89 : vector<1x1xf32>
      %91 = arith.divf %79, %90 : vector<1x1xf32>
      %cst_43 = arith.constant 0.000000e+00 : f32
      %92 = vector.broadcast %cst_43 : f32 to vector<1x1xf32>
      %93 = arith.select %88, %91, %92 : vector<1x1xi1>, vector<1x1xf32>
      %c0_44 = arith.constant 0 : index
      %c0_45 = arith.constant 0 : index
      %94 = vector.load %arg6[%c0_44, %c0_45] : memref<1x1xf32, #tpu.memory_space<vmem>>, vector<1x1xf32>
      tpu.vector_store %arg6[%c0_44, %c0_45], %93 {strides = array<i32>} : memref<1x1xf32, #tpu.memory_space<vmem>>, vector<1x1xf32>,
    } else {
    }
    return
  }
  func.func @transform_0(%arg0: i32) -> (i32, i32) {
    %c0_i32 = arith.constant 0 : i32
    %c0_i32_0 = arith.constant 0 : i32
    %c0_i32_1 = arith.constant 0 : i32
    return %c0_i32, %c0_i32_0 : i32, i32
  }
  func.func @transform_1(%arg0: i32) -> (i32, i32) {
    %c0_i32 = arith.constant 0 : i32
    %c0_i32_0 = arith.constant 0 : i32
    %c0_i32_1 = arith.constant 0 : i32
    return %c0_i32, %c0_i32_0 : i32, i32
  }
  func.func @transform_2(%arg0: i32) -> (i32, i32) {
    %c0_i32 = arith.constant 0 : i32
    %c0_i32_0 = arith.constant 0 : i32
    %c0_i32_1 = arith.constant 0 : i32
    return %c0_i32, %c0_i32_0 : i32, i32
  }
  func.func @transform_3(%arg0: i32) -> (i32, i32) {
    %c0_i32 = arith.constant 0 : i32
    %c0_i32_0 = arith.constant 0 : i32
    %c0_i32_1 = arith.constant 0 : i32
    return %c0_i32, %c0_i32_0 : i32, i32
  }
  func.func @transform_4(%arg0: i32) -> (i32, i32, i32) {
    %c0_i32 = arith.constant 0 : i32
    %c0_i32_0 = arith.constant 0 : i32
    %c0_i32_1 = arith.constant 0 : i32
    return %c0_i32, %arg0, %c0_i32_0 : i32, i32, i32
  }
  func.func @transform_5(%arg0: i32) -> (i32, i32) {
    %c0_i32 = arith.constant 0 : i32
    %c0_i32_0 = arith.constant 0 : i32
    %c0_i32_1 = arith.constant 0 : i32
    return %c0_i32, %c0_i32_0 : i32, i32
  }
}

</mosaic_0001>

<bundles_post_ra>
// kernel: lovasz_softmax_loss.2
= control target key start
LH: loop header
LB: loop body
LE: loop exit
PB: predicated region body
PF: predicated region fallthrough
CT: control target
= control target key end

     0   :  { %s711_s15 = smov 0   ;;  %s713_s16 = smov 0   ;;  %s823_s0 = inlined_call_operand.vmem [shape: f32[2,4,8,128], index: 0, kind: input, shape index: {}]   ;;  %s824_s1 = inlined_call_operand.vmem [shape: s32[2,8,128], index: 1, kind: input, shape index: {}]   ;;  %s825_s2 = inlined_call_operand.vmem [shape: s32[4,1], index: 2, kind: input, shape index: {}]   ;;  %s826_s3 = inlined_call_operand.vmem [shape: s32[4,16,128], index: 3, kind: output, shape index: {0}]   ;;  %s827_s4 = inlined_call_operand.vmem [shape: f32[2,4,1], index: 4, kind: output, shape index: {1}]  }
   0x1   :  { %s715_s17 = smov 0   ;;  %s717_s18 = smov 0  }
   0x2   :  { %s719_s19 = smov 0  }
   0x3 LB: > { %s571_s20 = sadd.s32 4294967295, %s682_s19   ;;  %s27_s21 = sadd.s32 1, %s678_s18  ;;  %s682_s19 = sphi %s719_s19, %s15_s19   ;;  %s678_s18 = sphi %s717_s18, %s832_s18   ;;  %s674_s17 = sphi %s715_s17, %s831_s17   ;;  %s670_s16 = sphi %s713_s16, %s830_s16   ;;  %s666_s15 = sphi %s711_s15, %s829_s15  }
   0x4   : > { %p29_p0 = scmp.ge.s32.totalorder %s27_s21, 2  ;;  %s113_s22 = sadd.s32 1, %s670_s16 }
   0x5   : > { %p123_p1 = scmp.ne.s32.totalorder %s670_s16, %s666_s15  ;;  %p124_p2 = scmp.eq.s32.totalorder %s571_s20, 1 }
   0x6   : > { %s834_s21 = smov (%p29_p0, %s27_s21), 0  ;;  %p575_p4 = scmp.ge.s32.totalorder %s682_s19, 1 }
   0x7   : > { %p743_p3 = por %p124_p2, %p123_p1  ;;  %s110_s24 = ssub.s32 %s678_s18, %s834_s21 }
   0x8   : > { %p200_p5 = scmp.lt.s32.totalorder %s682_s19, 3  ;;  %p111_p6 = scmp.eq.s32.totalorder %s110_s24, 0 }
   0xa   : > { %p201_p7 = pnand %p575_p4, %p200_p5 }
   0xb   : > { %s752_s25 = scalar_select %p111_p6, %s670_s16, %s113_s22  }
   0xc   : > { %204 = sbr.rel (%p201_p7) target bundleno = 384 (0x180), region = 32  ;;  %p240_p8 = scmp.lt.s32.totalorder (!%p201_p7), %s674_s17, 1 }
   0xd   : > { %s230_s11 = sand.u32 (!%p201_p7), 1, %s666_s15  }
   0xe   : > { %s576_s12 = sshll.u32 (!%p201_p7), %s230_s11, 5 }
   0xf   : > { %s782_s13 = scalar_lea.vmem (!%p201_p7), [#allocation2], %s576_s12 }
  0x11   : > { %v304_v0 = vld [vmem:[%s825_s2] sm:$0xf]  ;;  %v684_v1 = vmov 0   ;;  %s761_s28 = scalar_select %p240_p8, %s674_s17, 1  ;;  %v685_v46 = vmov 0.0   ;;  %vm388_vm9 = vcmask 1041409  }
  0x12   : > { %632 = vset.pattern.permute.xlu0 %v684_v1  ;;  %v308_v2 = vperm.slane %v304_v0, 0  ;;  %633 = vset.pattern.permute.xlu1 %v684_v1  ;;  %v306_v3 = vrot.slane %v304_v0, 2  ;;  %v305_v5 = vrot.slane %v304_v0, 1  ;;  %v307_v6 = vrot.slane %v304_v0, 3  ;;  %s586_s24 = sshll.u32 (%p743_p3), %s674_s17, 3 }
  0x13   : > { %s589_s29 = sshll.u32 %s761_s28, 5  ;;  %s579_s7 = sshll.u32 %s761_s28, 3  ;;  %vm390_vm10 = vcmask 1042434   ;;  %vm392_vm11 = vcmask 1043459   ;;  %vm395_vm12 = vcmask 60416   ;;  %vm399_vm13 = vcmask 3072  }
  0x14   : > { %313 = vperm.xlu0 %632, %v308_v2   ;;  %v310_v4 = vperm.slane %v306_v3, 0  ;;  %v309_v7 = vperm.slane %v305_v5, 0  ;;  %v311_v8 = vperm.slane %v307_v6, 0  ;;  %s247_s6 = scalar_lea.vmem %s823_s0, %s589_s29  ;;  %s254_s10 = scalar_lea.vmem %s824_s1, %s579_s7 }
  0x15   : > { %v264_v9 = vld [vmem:[%s247_s6 + $0x10] sm:$0xff]  ;;  %v265_v10 = vld [vmem:[%s247_s6 + $0x18] sm:$0xff]  ;;  %v262_v11 = vld [vmem:[%s247_s6] sm:$0xff]  ;;  %s580_s14 = sshll.u32 %s761_s28, 2  ;;  %s415_s28 = scalar_lea.vmem (%p743_p3), %s826_s3, %s586_s24 }
  0x16   : > { %319 = vperm.xlu1 %633, %v310_v4   ;;  %v263_v12 = vld [vmem:[%s247_s6 + $0x8] sm:$0xff]  ;;  %v269_v13 = vmax.f32 %v264_v9, %v265_v10  ;;  %v266_v41 = vld [vmem:[%s254_s10] sm:$0xff]  ;;  %s260_s22 = scalar_lea.vmem %s827_s4, %s580_s14 }
  0x17   : > { %v268_v14 = vmax.f32 %v262_v11, %v263_v12  ;;  %vm267_vm6 = vcmp.ge.s32.totalorder %v266_v41, 0 }
  0x19   : > { %v270_v15 = vmax.f32 %v268_v14, %v269_v13 }
  0x1b   : > { %v271_v16 = vsub.f32 %v262_v11, %v270_v15  ;;  %v272_v17 = vsub.f32 %v263_v12, %v270_v15  ;;  %v273_v19 = vsub.f32 %v264_v9, %v270_v15  ;;  %v274_v21 = vsub.f32 %v265_v10, %v270_v15 }
  0x1c   : > { %316 = vperm.xlu0 %632, %v309_v7  }
  0x1d   : > { %v275_v18 = vmul.f32 1.442695, %v271_v16  ;;  %v277_v20 = vmul.f32 1.442695, %v272_v17  ;;  %v279_v22 = vmul.f32 1.442695, %v273_v19 }
  0x1e   : > { %322 = vperm.xlu1 %633, %v311_v8   ;;  %v281_v23 = vmul.f32 1.442695, %v274_v21  ;;  %v382_v21 = vlaneseq }
  0x1f   : > { %634 = vpow2.f32 %v275_v18 }
  0x20   : > { %636 = vpow2.f32 %v277_v20 }
  0x21   : > { %638 = vpow2.f32 %v279_v22  ;;  %v383_v22 = vand.u32 127, %v382_v21 }
  0x22   : > { %640 = vpow2.f32 %v281_v23 }
  0x25   : > { %v635_v24 = vpop.eup %634 }
  0x26   : > { %v637_v25 = vpop.eup %636 }
  0x27   : > { %v283_v26 = vadd.f32 %v637_v25, %v635_v24  ;;  %v639_v27 = vpop.eup %638 }
  0x28   : > { %v641_v29 = vpop.eup %640 }
  0x29   : > { %v284_v28 = vadd.f32 %v639_v27, %v283_v26 }
  0x2b   : > { %v285_v30 = vadd.f32 %v641_v29, %v284_v28 }
  0x2d   : > { %642 = vrcp.f32 %v285_v30  ;;  %vm291_vm0 = vweird.f32 %v285_v30  ;;  %v297_v35 = vand.u32 2147483648, %v285_v30  ;;  %v295_v37 = vand.u32 2147483647, %v285_v30 }
  0x2f   : > { %v298_v38 = vor.u32 1.1754944e-38, %v297_v35  ;;  %vm296_vm3 = vcmp.eq.f32.partialorder %v295_v37, 8.507059e+37 }
  0x33   : > { %v643_v31 = vpop.eup %642 }
  0x34   : > { %v287_v32 = vmul.f32 %v643_v31, %v285_v30  ;;  %vm292_vm1 = vweird.f32 %v643_v31 }
  0x35   : > { %vm293_vm2 = vmor %vm291_vm0, %vm292_vm1 }
  0x36   : > { %v288_v33 = vsub.f32 1.0, %v287_v32 }
  0x38   : > { %v289_v34 = vmul.f32 %v643_v31, %v288_v33 }
  0x3a   : > { %v290_v36 = vadd.f32 %v643_v31, %v289_v34 }
  0x3c   : > { %v294_v39 = vsel %vm293_vm2, %v643_v31, %v290_v36 }
  0x3d   : > { %v299_v40 = vsel %vm296_vm3, %v298_v38, %v294_v39 }
  0x3e   : > { %v300_v42 = vmul.f32 %v635_v24, %v299_v40  ;;  %v302_v44 = vmul.f32 %v639_v27, %v299_v40  ;;  %v301_v54 = vmul.f32 %v637_v25, %v299_v40  ;;  %v303_v59 = vmul.f32 %v641_v29, %v299_v40 }
  0x86   : > { %v314_v43 = vpop.permute.xlu0 %313 }
  0x87   : > { %vm324_vm4 = vcmp.eq.s32.totalorder %v266_v41, %v314_v43 }
  0x88   : > { %v320_v45 = vpop.permute.xlu1 %319  ;;  %v581_v47 = vsel %vm324_vm4, 1.0, %v685_v46  ;;  %v328_v57 = vsel %vm324_vm4, 1, %v684_v1 }
  0x89   : > { %vm326_vm5 = vcmp.eq.s32.totalorder %v266_v41, %v320_v45  ;;  %370 = vadd.xlane.f32.xlu2 %v581_v47  ;;  %v336_v48 = vsub.f32 %v581_v47, %v300_v42 }
  0x8a   : > { %v583_v49 = vsel %vm326_vm5, 1.0, %v685_v46  ;;  %v330_v0 = vsel %vm326_vm5, 1, %v684_v1 }
  0x8b   : > { %v340_v50 = vand.u32 2147483647, %v336_v48  ;;  %374 = vadd.xlane.f32.xlu0 %v583_v49  ;;  %v338_v51 = vsub.f32 %v583_v49, %v302_v44 }
  0x8d   : > { %v346_v52 = vsel %vm267_vm6, %v340_v50, 0.0  ;;  %v342_v53 = vand.u32 2147483647, %v338_v51 }
  0x8e   : > { %v354_v55 = vshll.u32 %v346_v52, 1  ;;  %v317_v56 = vpop.permute.xlu0 %316 }
  0x8f   : > { %v348_v58 = vsel %vm267_vm6, %v342_v53, 0.0  ;;  %vm325_vm7 = vcmp.eq.s32.totalorder %v266_v41, %v317_v56 }
  0x90   : > { %v358_v60 = vor.u32 %v354_v55, %v328_v57  ;;  %v356_v61 = vshll.u32 %v348_v58, 1  ;;  %v323_v62 = vpop.permute.xlu1 %322  ;;  %v582_v63 = vsel %vm325_vm7, 1.0, %v685_v46  ;;  %v329_v12 = vsel %vm325_vm7, 1, %v684_v1 }
  0x91   : > { %vm327_vm8 = vcmp.eq.s32.totalorder %v266_v41, %v323_v62  ;;  %372 = vadd.xlane.f32.xlu2 %v582_v63  ;;  %v337_v2 = vsub.f32 %v582_v63, %v301_v54 }
  0x92   : > { %v362_v3 = vsub.s32 0, %v358_v60  ;;  %v360_v4 = vor.u32 %v356_v61, %v330_v0  ;;  %v584_v5 = vsel %vm327_vm8, 1.0, %v685_v46  ;;  %v331_v16 = vsel %vm327_vm8, 1, %v684_v1 }
  0x93   : > { %v341_v6 = vand.u32 2147483647, %v337_v2  ;;  %376 = vadd.xlane.f32.xlu1 %v584_v5  ;;  %v339_v7 = vsub.f32 %v584_v5, %v303_v59 }
  0x94   : > { %366 = vst [vmem:[%s782_s13] sm:$0xff] %v362_v3  ;;  %v364_v8 = vsub.s32 0, %v360_v4 }
  0x95   : > { %v347_v9 = vsel %vm267_vm6, %v341_v6, 0.0  ;;  %v343_v10 = vand.u32 2147483647, %v339_v7 }
  0x96   : > { %368 = vst [vmem:[%s782_s13 + $0x10] sm:$0xff] %v364_v8  ;;  %v355_v11 = vshll.u32 %v347_v9, 1 }
  0x97   : > { %v349_v13 = vsel %vm267_vm6, %v343_v10, 0.0 }
  0x98   : > { %v359_v14 = vor.u32 %v355_v11, %v329_v12  ;;  %v357_v15 = vshll.u32 %v349_v13, 1 }
  0x9a   : > { %v363_v17 = vsub.s32 0, %v359_v14  ;;  %v361_v18 = vor.u32 %v357_v15, %v331_v16 }
  0x9b   : > { %v450_v34 = vld [vmem:[%s782_s13] sm:$0xff] (%p743_p3) }
  0x9c   : > { %367 = vst [vmem:[%s782_s13 + $0x8] sm:$0xff] %v363_v17  ;;  %v365_v19 = vsub.s32 0, %v361_v18 }
  0x9d   : > { %v454_v36 = vld [vmem:[%s782_s13 + $0x10] sm:$0xff] (%p743_p3)  ;;  %451 = vst [vmem:[%s415_s28] sm:$0xff] (%p743_p3), %v450_v34 }
  0x9e   : > { %369 = vst [vmem:[%s782_s13 + $0x18] sm:$0xff] %v365_v19 }
  0x9f   : > { %455 = vst [vmem:[%s415_s28 + $0x20] sm:$0xff] (%p743_p3), %v454_v36 }
  0xa3   : > { %v452_v35 = vld [vmem:[%s782_s13 + $0x8] sm:$0xff] (%p743_p3) }
  0xa4   : > { %453 = vst [vmem:[%s415_s28 + $0x10] sm:$0xff] (%p743_p3), %v452_v35 }
  0xa5   : > { %v456_v37 = vld [vmem:[%s782_s13 + $0x18] sm:$0xff] (%p743_p3) }
  0xa6   : > { %457 = vst [vmem:[%s415_s28 + $0x30] sm:$0xff] (%p743_p3), %v456_v37 }
  0xfc   : > { %v371_v20 = vpop.xlane.xlu2 %370 }
  0xfd   : > { %v384_v25 = vperm.slane %v371_v20, %v383_v22 }
  0xfe   : > { %v375_v23 = vpop.xlane.xlu0 %374 }
  0xff   : > { %v386_v27 = vperm.slane %v375_v23, %v383_v22 }
 0x104   : > { %v373_v24 = vpop.xlane.xlu2 %372 }
 0x105   : > { %v385_v26 = vperm.slane %v373_v24, %v383_v22 }
 0x106   : > { %v377_v28 = vpop.xlane.xlu1 %376 }
 0x107   : > { %v389_v29 = vsel %vm388_vm9, %v385_v26, %v384_v25  ;;  %v387_v1 = vperm.slane %v377_v28, %v383_v22 }
 0x108   : > { %v391_v30 = vsel %vm390_vm10, %v386_v27, %v389_v29 }
 0x109   : > { %v393_v31 = vsel %vm392_vm11, %v387_v1, %v391_v30 }
 0x10a   : > { %v396_v32 = vsel %vm395_vm12, %v393_v31, 0.0 }
 0x10b   : > { %397 = vadd.xlane.f32.xlu2 %v396_v32 }
 0x17b   : > { %412 = sbr.rel (!%p743_p3) target bundleno = 384 (0x180), region = 36 }
 0x17e   : > { %v398_v33 = vpop.xlane.xlu2 %397 }
 0x17f   : > { %400 = vst.msk [vmem:[%s260_s22] sm:$0xf] %vm399_vm13, %v398_v33 }
 0x180 PF: > { %s15_s19 = sadd.s32 1, %s682_s19   ;;  %s829_s15 = smov %s670_s16 }
 0x181   : > { %p12_p9 = scmp.ge.s32.totalorder %s15_s19, 4   ;;  %s830_s16 = smov %s752_s25 }
 0x182   : > { %s831_s17 = smov %s678_s18  ;;  %s832_s18 = smov %s834_s21 }
 0x183   :  { %14 = sbr.rel (!%p12_p9) target bundleno = 3 (0x3), region = 115 }

// kernel: lovasz_softmax_loss.3
= control target key start
LH: loop header
LB: loop body
LE: loop exit
PB: predicated region body
PF: predicated region fallthrough
CT: control target
= control target key end

     0   :  { %v843_v3 = vmov 127   ;;  %s1302_s0 = inlined_call_operand.vmem [shape: f32[4,1], index: 0, kind: input, shape index: {}]   ;;  %s1303_s1 = inlined_call_operand.vmem [shape: bf16[128,128], index: 1, kind: input, shape index: {}]   ;;  %s1304_s2 = inlined_call_operand.vmem [shape: f32[16,16], index: 2, kind: input, shape index: {}]   ;;  %s1305_s3 = inlined_call_operand.vmem [shape: f32[16,128], index: 3, kind: input, shape index: {}]   ;;  %s1306_s4 = inlined_call_operand.vmem [shape: s32[4,16,128], index: 4, kind: input, shape index: {}]   ;;  %s1307_s5 = inlined_call_operand.hbm [shape: f32[1,1], index: 5, kind: output, shape index: {}]  }
   0x1   :  { %v751_v0 = vld [vmem:[%s1303_s1 + $0x38] sm:$0xff]  ;;  %v750_v1 = vld [vmem:[%s1303_s1 + $0x30] sm:$0xff]  ;;  %v749_v2 = vld [vmem:[%s1303_s1 + $0x28] sm:$0xff]  ;;  %785 = vset.pattern.permute.xlu1 %v843_v3  ;;  %784 = vset.pattern.permute.xlu0 %v843_v3 }
   0x2   :  { %172 = vmatpush.bf16.msra.mxu0 %v751_v0  ;;  %752 = vmatpush.bf16.msra.mxu1 %v751_v0  ;;  %v889_v4 = vld [vmem:[%s1306_s4] sm:$0xff]  ;;  %v894_v5 = vld [vmem:[%s1306_s4 + $0x8] sm:$0xff]  ;;  %v899_v6 = vld [vmem:[%s1306_s4 + $0x10] sm:$0xff] }
   0x3   :  { %754 = vmatpush.bf16.msra.mxu3 %v751_v0  ;;  %753 = vmatpush.bf16.msra.mxu2 %v751_v0  ;;  %v904_v7 = vld [vmem:[%s1306_s4 + $0x18] sm:$0xff]  ;;  %v909_v8 = vld [vmem:[%s1306_s4 + $0x30] sm:$0xff] }
   0x4   :  { %786 = vset.pattern.permute.xlu2 %v843_v3 }
   0x6   :  { %173 = vmatpush.bf16.msra.mxu0 %v750_v1  ;;  %755 = vmatpush.bf16.msra.mxu1 %v750_v1 }
   0x7   :  { %10 = vsyncpa [#allocation5], 0  ;;  %757 = vmatpush.bf16.msra.mxu3 %v750_v1  ;;  %756 = vmatpush.bf16.msra.mxu2 %v750_v1  ;;  %v914_v9 = vld [vmem:[%s1306_s4 + $0x38] sm:$0xff]  ;;  %v919_v10 = vld [vmem:[%s1306_s4 + $0x20] sm:$0xff]  ;;  %v36_v12 = vsub.s32 0, %v889_v4  ;;  %v37_v13 = vsub.s32 0, %v894_v5 }
   0x8   :  { %v924_v11 = vld [vmem:[%s1306_s4 + $0x28] sm:$0xff]  ;;  %v38_v14 = vsub.s32 0, %v899_v6  ;;  %v39_v15 = vsub.s32 0, %v904_v7  ;;  %v1309_v16 = vsub.s32 0, %v909_v8  ;;  %v748_v17 = vld [vmem:[%s1303_s1 + $0x20] sm:$0xff]  ;;  %v1310_v18 = vsub.s32 0, %v914_v9 }
   0x9   :  { %v1311_v19 = vsub.s32 0, %v919_v10  ;;  %v41_v20 = vsub.s32 0, %v924_v11  ;;  %v44_v21 = vand.u32 1, %v36_v12  ;;  %v45_v22 = vand.u32 1, %v37_v13  ;;  %v747_v26 = vld [vmem:[%s1303_s1 + $0x18] sm:$0xff]  ;;  %v746_v35 = vld [vmem:[%s1303_s1 + $0x10] sm:$0xff] }
   0xa   :  { %174 = vmatpush.bf16.msra.mxu0 %v749_v2  ;;  %758 = vmatpush.bf16.msra.mxu1 %v749_v2  ;;  %v46_v23 = vand.u32 1, %v38_v14  ;;  %v47_v24 = vand.u32 1, %v39_v15  ;;  %v50_v25 = vand.u32 1, %v1309_v16  ;;  %v51_v27 = vand.u32 1, %v1310_v18  ;;  %v745_v44 = vld [vmem:[%s1303_s1 + $0x8] sm:$0xff]  ;;  %v744_v52 = vld [vmem:[%s1303_s1] sm:$0xff] }
   0xb   :  { %760 = vmatpush.bf16.msra.mxu3 %v749_v2  ;;  %759 = vmatpush.bf16.msra.mxu2 %v749_v2  ;;  %v48_v28 = vand.u32 1, %v1311_v19  ;;  %v49_v29 = vand.u32 1, %v41_v20  ;;  %v956_v30 = vcvt.s32.f32 %v44_v21  ;;  %v958_v31 = vcvt.s32.f32 %v45_v22  ;;  %v202_v21 = vld [vmem:[%s1304_s2 + $0x8] sm:$0xff]  ;;  %v201_v22 = vld [vmem:[%s1304_s2] sm:$0xff]  ;;  %s846_s9 = smov [#allocation4]   ;;  %s693_s13 = sshll.u32 %s1307_s5, 4  ;;  %s694_s13 = int_to_ptr.hbm [resolvable:$true] %s693_s13 }
   0xc   :  { %v960_v32 = vcvt.s32.f32 %v46_v23  ;;  %v962_v33 = vcvt.s32.f32 %v47_v24  ;;  %v964_v34 = vcvt.s32.f32 %v50_v25  ;;  %v969_v36 = vcvt.s32.f32 %v51_v27  ;;  %v1030_v23 = vld [vmem:[%s1302_s0] sm:$0xf]  ;;  %s691_s10 = sshll.u32 %s846_s9, 4  ;;  %s692_s10 = int_to_ptr.vmem [resolvable:$true] %s691_s10 }
   0xd   :  { %v971_v37 = vcvt.s32.f32 %v48_v28  ;;  %v973_v38 = vcvt.s32.f32 %v49_v29  ;;  %v76_v39 = vpack.c.bf16 %v956_v30, %v956_v30  ;;  %v77_v40 = vpack.c.bf16 %v958_v31, %v958_v31 }
   0xe   :  { %175 = vmatpush.bf16.msra.mxu0 %v748_v17  ;;  %761 = vmatpush.bf16.msra.mxu1 %v748_v17  ;;  %v78_v41 = vpack.c.bf16 %v960_v32, %v960_v32  ;;  %v79_v42 = vpack.c.bf16 %v962_v33, %v962_v33  ;;  %v82_v43 = vpack.c.bf16 %v964_v34, %v964_v34  ;;  %vm1313_vm0 = vcmask 3072  }
   0xf   :  { %763 = vmatpush.bf16.msra.mxu3 %v748_v17  ;;  %762 = vmatpush.bf16.msra.mxu2 %v748_v17  ;;  %v83_v45 = vpack.c.bf16 %v969_v36, %v969_v36  ;;  %v80_v46 = vpack.c.bf16 %v971_v37, %v971_v37  ;;  %v81_v47 = vpack.c.bf16 %v973_v38, %v973_v38  ;;  %v108_v48 = vunpack.c.l.b16 %v76_v39 }
  0x10   :  { %v109_v49 = vunpack.c.l.b16 %v77_v40  ;;  %v110_v50 = vunpack.c.l.b16 %v78_v41  ;;  %v111_v51 = vunpack.c.l.b16 %v79_v42  ;;  %v114_v53 = vunpack.c.l.b16 %v82_v43 }
  0x11   :  { %v115_v54 = vunpack.c.l.b16 %v83_v45  ;;  %v112_v55 = vunpack.c.l.b16 %v80_v46  ;;  %v113_v56 = vunpack.c.l.b16 %v81_v47  ;;  %v844_v24 = vmov 0  }
  0x12   :  { %176 = vmatpush.bf16.msra.mxu0 %v747_v26  ;;  %764 = vmatpush.bf16.msra.mxu1 %v747_v26  ;;  %v116_v57 = vpack.c.b16 %v109_v49, %v108_v48  ;;  %v117_v58 = vpack.c.b16 %v111_v51, %v110_v50  ;;  %v1308_v25 = vmov 0.0   ;;  %v349_v27 = vrot.slane %v1030_v23, 2 }
  0x13   :  { %766 = vmatpush.bf16.msra.mxu3 %v747_v26  ;;  %765 = vmatpush.bf16.msra.mxu2 %v747_v26  ;;  %v119_v59 = vpack.c.b16 %v115_v54, %v114_v53  ;;  %v118_v60 = vpack.c.b16 %v113_v56, %v112_v55  ;;  %26 = vst.msk [vmem:[#allocation2] sm:$0xf] %vm1313_vm0, %v1308_v25  ;;  %v348_v26 = vrot.slane %v1030_v23, 1  ;;  %v241_v39 = vlaneseq }
  0x14   :  { %27 = vst.msk [vmem:[#allocation3] sm:$0xf] %vm1313_vm0, %v1308_v25  ;;  %v362_v29 = vperm.slane %v349_v27, 0  ;;  %v360_v43 = vperm.slane %v1030_v23, 0  ;;  %vm246_vm1 = vcmask 130112   ;;  %vm257_vm2 = vcmask 1041409  }
  0x15   :  { %v361_v28 = vperm.slane %v348_v26, 0  ;;  %vm1315_vm3 = vcmask 1042434   ;;  %vm1314_vm4 = vcmask 1043459   ;;  %vm263_vm5 = vcmask 130048  }
  0x16   :  { %177 = vmatpush.bf16.msra.mxu0 %v746_v35  ;;  %767 = vmatpush.bf16.msra.mxu1 %v746_v35  ;;  %vm534_vm10 = vcmp.gt.f32.partialorder %v960_v32, 0.5  ;;  %vm533_vm12 = vcmp.gt.f32.partialorder %v958_v31, 0.5  ;;  %vm532_vm15 = vcmp.gt.f32.partialorder %v956_v30, 0.5 }
  0x17   :  { %769 = vmatpush.bf16.msra.mxu3 %v746_v35  ;;  %768 = vmatpush.bf16.msra.mxu2 %v746_v35 }
  0x1a   :  { %178 = vmatpush.bf16.msra.mxu0 %v745_v44  ;;  %770 = vmatpush.bf16.msra.mxu1 %v745_v44  ;;  %v203_v35 = vld [vmem:[#allocation2] sm:$0xf] }
  0x1b   :  { %772 = vmatpush.bf16.msra.mxu3 %v745_v44  ;;  %771 = vmatpush.bf16.msra.mxu2 %v745_v44  ;;  %v1042_v44 = vand.u32 127, %v241_v39 }
  0x1d   :  { %v1045_v45 = vadd.s32 4294967288, %v1042_v44 }
  0x1e   :  { %179 = vmatpush.bf16.msra.mxu0 %v744_v52  ;;  %773 = vmatpush.bf16.msra.mxu1 %v744_v52 }
  0x1f   :  { %775 = vmatpush.bf16.msra.mxu3 %v744_v52  ;;  %774 = vmatpush.bf16.msra.mxu2 %v744_v52 }
  0x21   :  { %180 = vmatmul.bf16.vlgmr.msra.gmra.mxu0 %v116_v57  ;;  %185 = vmatmul.bf16.vlgmr.msra.gmra.mxu1 %v117_v58 }
  0x22   :  { %195 = vmatmul.bf16.vlgmr.msra.gmra.mxu3 %v119_v59  ;;  %190 = vmatmul.bf16.vlgmr.msra.gmra.mxu2 %v118_v60 }
  0x23   :  { %280 = vmatpush.msrb.mxu1 %v202_v21 }
  0x25   :  { %281 = vmatpush.msrb.mxu1 %v201_v22 }
  0x9e   :  { %v997_v61 = vpop.f32.mrf.mxu0  ;;  %v999_v62 = vpop.f32.mrf.mxu1 }
  0x9f   :  { %224 = vperm.xlu1 %785, %v999_v62   ;;  %218 = vperm.xlu0 %784, %v997_v61  }
  0xa5   :  { %v1003_v63 = vpop.f32.mrf.mxu3  ;;  %v1005_v0 = vpop.f32.mrf.mxu2 }
  0xa6   :  { %v1007_v1 = vpop.f32.mrf.mxu0  ;;  %v1009_v2 = vpop.f32.mrf.mxu1  ;;  %230 = vperm.xlu2 %786, %v1005_v0  }
  0xa7   :  { %227 = vperm.xlu1 %785, %v1009_v2   ;;  %221 = vperm.xlu0 %784, %v1007_v1  }
  0xad   :  { %v1014_v3 = vpop.f32.mrf.mxu2  ;;  %v1016_v17 = vpop.f32.mrf.mxu3 }
  0xae   :  { %233 = vperm.xlu2 %786, %v1014_v3  }
  0xaf   :  { %239 = vperm.xlu1 %785, %v1016_v17   ;;  %236 = vperm.xlu0 %784, %v1003_v63  }
  0xb6   :  { %787 = vset.pattern.permute.xlu2 %v844_v24 }
  0xb7   :  { %788 = vset.pattern.permute.xlu0 %v844_v24  ;;  %789 = vset.pattern.permute.xlu1 %v844_v24 }
  0xb8   :  { %369 = vperm.xlu0 %788, %v361_v28   ;;  %373 = vperm.xlu1 %789, %v362_v29   ;;  %v288_v29 = vshrl.u32 %v241_v39, 7  ;;  %v350_v39 = vrot.slane %v1030_v23, 3 }
  0xb9   :  { %206 = vperm.xlu2 %787, %v203_v35  }
  0xba   :  { %v295_v35 = vadd.s32 8, %v288_v29 }
  0xc0   :  { %790 = vset.pattern.permute.xlu0 %v288_v29  ;;  %791 = vset.pattern.permute.xlu1 %v295_v35 }
  0xc1   :  { %365 = vperm.xlu2 %787, %v360_v43  }
  0xc9   :  { %792 = vset.pattern.permute.xlu2 %v288_v29 }
 0x100   :  { %v231_v42 = vpop.permute.xlu2 %230 }
 0x101   :  { %v251_v55 = vperm.slane %v231_v42, %v1042_v44 }
 0x108   :  { %v234_v52 = vpop.permute.xlu2 %233 }
 0x109   :  { %v252_v56 = vperm.slane %v234_v52, %v1045_v45 }
 0x10b   :  { %v253_v22 = vsel %vm246_vm1, %v252_v56, %v251_v55 }
 0x111   :  { %v225_v40 = vpop.permute.xlu1 %224  ;;  %v219_v41 = vpop.permute.xlu0 %218 }
 0x112   :  { %v248_v50 = vperm.slane %v225_v40, %v1042_v44  ;;  %v243_v51 = vperm.slane %v219_v41, %v1042_v44 }
 0x113   :  { %v207_v40 = vpop.permute.xlu2 %206 }
 0x119   :  { %v228_v46 = vpop.permute.xlu1 %227  ;;  %v222_v47 = vpop.permute.xlu0 %221 }
 0x11a   :  { %v249_v48 = vperm.slane %v228_v46, %v1045_v45  ;;  %v245_v49 = vperm.slane %v222_v47, %v1045_v45 }
 0x11c   :  { %v250_v53 = vsel %vm246_vm1, %v249_v48, %v248_v50  ;;  %v247_v54 = vsel %vm246_vm1, %v245_v49, %v243_v51  ;;  %v363_v49 = vperm.slane %v350_v39, 0  ;;  %v1068_v50 = vpop.permute.xlu2 %365  ;;  %v353_v51 = vld [vmem:[%s1305_s3] sm:$0xff] }
 0x11d   :  { %v258_v57 = vsel %vm257_vm2, %v250_v53, %v247_v54  ;;  %v1075_v53 = vadd.f32 1.0, %v353_v51 }
 0x11e   :  { %v260_v27 = vsel %vm1315_vm3, %v253_v22, %v258_v57  ;;  %vm537_vm3 = vcmp.gt.f32.partialorder %v973_v38, 0.5 }
 0x121   :  { %v240_v58 = vpop.permute.xlu1 %239  ;;  %v237_v59 = vpop.permute.xlu0 %236 }
 0x122   :  { %v255_v60 = vperm.slane %v240_v58, %v1045_v45  ;;  %v254_v21 = vperm.slane %v237_v59, %v1042_v44  ;;  %v354_v59 = vld [vmem:[%s1305_s3 + $0x8] sm:$0xff] }
 0x124   :  { %v256_v26 = vsel %vm246_vm1, %v255_v60, %v254_v21  ;;  %v1085_v21 = vadd.f32 1.0, %v354_v59 }
 0x125   :  { %v1062_v28 = vsel %vm1314_vm4, %v256_v26, %v260_v27 }
 0x126   :  { %734 = vmatmul.msk.f32.vlgmr.msrb.gmra.mxu1 %vm263_vm5, %v1062_v28 }
 0x12a   :  { %v1073_v52 = vpop.permute.xlu0 %369  ;;  %v1083_v60 = vpop.permute.xlu1 %373 }
 0x12b   :  { %v382_v23 = vadd.f32 %v1073_v52, %v1075_v53  ;;  %v385_v27 = vadd.f32 %v1083_v60, %v1085_v21 }
 0x1a3   :  { %v283_v41 = vpop.f32.mrf.mxu1 }
 0x1a4   :  { %v284_v42 = vadd.f32 %v283_v41, %v207_v40 }
 0x1a6   :  { %v299_v43 = vperm.slane %v284_v42, 1  ;;  %v286_v46 = vperm.slane %v284_v42, 0  ;;  %v312_v47 = vperm.slane %v284_v42, 2  ;;  %v325_v48 = vperm.slane %v284_v42, 3 }
 0x1a8   :  { %304 = vperm.xlu2 %792, %v299_v43   ;;  %297 = vperm.xlu1 %791, %v286_v46  }
 0x1a9   :  { %291 = vperm.xlu0 %790, %v286_v46  }
 0x1b0   :  { %794 = vset.pattern.permute.xlu2 %v295_v35  ;;  %310 = vperm.xlu1 %791, %v299_v43  }
 0x1b1   :  { %796 = vset.pattern.permute.xlu0 %v295_v35 }
 0x1b8   :  { %323 = vperm.xlu2 %794, %v312_v47   ;;  %793 = vset.pattern.permute.xlu1 %v288_v29 }
 0x1b9   :  { %336 = vperm.xlu0 %796, %v325_v48  }
 0x1c0   :  { %795 = vset.pattern.permute.xlu2 %v288_v29  ;;  %317 = vperm.xlu1 %793, %v312_v47  }
 0x1c1   :  { %798 = vset.pattern.permute.xlu0 %v844_v24 }
 0x1c8   :  { %330 = vperm.xlu2 %795, %v325_v48   ;;  %797 = vset.pattern.permute.xlu1 %v844_v24 }
 0x1c9   :  { %377 = vperm.xlu1 %797, %v363_v49   ;;  %v381_v49 = vadd.f32 %v1068_v50, %v1085_v21 }
 0x202   :  { %v305_v54 = vpop.permute.xlu2 %304 }
 0x203   :  { %v340_v55 = vadd.f32 %v305_v54, %v999_v62 }
 0x205   :  { %v390_v56 = vsub.f32 %v382_v23, %v340_v55 }
 0x207   :  { %v737_v57 = vadd.f32 -1.0, %v390_v56 }
 0x209   :  { %v406_v24 = vmax.f32 %v737_v57, 1.0 }
 0x20b   :  { %v414_v58 = vmul.f32 %v406_v24, %v390_v56  ;;  %v380_v56 = vadd.f32 %v1068_v50, %v1075_v53 }
 0x20d   :  { %799 = vrcp.f32 %v414_v58  ;;  %v459_v41 = vand.u32 2147483648, %v414_v58  ;;  %v457_v46 = vand.u32 2147483647, %v414_v58  ;;  %vm453_vm7 = vweird.f32 %v414_v58 }
 0x20f   :  { %vm458_vm9 = vcmp.eq.f32.partialorder %v457_v46, 8.507059e+37 }
 0x212   :  { %v324_v22 = vpop.permute.xlu2 %323 }
 0x213   :  { %v800_v26 = vpop.eup %799  ;;  %v1090_v62 = vadd.f32 %v324_v22, %v1014_v3  ;;  %v460_v3 = vor.u32 1.1754944e-38, %v459_v41 }
 0x214   :  { %v449_v29 = vmul.f32 %v800_v26, %v414_v58  ;;  %vm454_vm6 = vweird.f32 %v800_v26  ;;  %v550_v58 = vsub.f32 %v1073_v52, %v340_v55 }
 0x215   :  { %v393_v35 = vsub.f32 %v385_v27, %v1090_v62  ;;  %vm455_vm8 = vmor %vm453_vm7, %vm454_vm6  ;;  %v62_v27 = vshra.s32 %v38_v14, 1  ;;  %v383_v14 = vadd.f32 %v1073_v52, %v1085_v21 }
 0x216   :  { %v450_v40 = vsub.f32 1.0, %v449_v29 }
 0x217   :  { %v1093_v42 = vadd.f32 -1.0, %v393_v35 }
 0x218   :  { %v451_v43 = vmul.f32 %v800_v26, %v450_v40 }
 0x219   :  { %v409_v47 = vmax.f32 %v1093_v42, 1.0 }
 0x21a   :  { %v452_v48 = vadd.f32 %v800_v26, %v451_v43  ;;  %v298_v39 = vpop.permute.xlu1 %297 }
 0x21b   :  { %v1100_v51 = vmul.f32 %v409_v47, %v393_v35  ;;  %v1103_v23 = vadd.f32 %v298_v39, %v1007_v1  ;;  %v292_v54 = vpop.permute.xlu0 %291 }
 0x21c   :  { %v456_v57 = vsel %vm455_vm8, %v800_v26, %v452_v48  ;;  %v1109_v59 = vadd.f32 %v292_v54, %v997_v61 }
 0x21d   :  { %v461_v22 = vsel %vm458_vm9, %v460_v3, %v456_v57  ;;  %801 = vrcp.f32 %v1100_v51  ;;  %v389_v35 = vsub.f32 %v381_v49, %v1103_v23  ;;  %v499_v57 = vand.u32 2147483647, %v1100_v51 }
 0x21e   :  { %v542_v1 = vmul.f32 %v461_v22, %v406_v24  ;;  %v558_v29 = vmul.f32 %v550_v58, %v461_v22  ;;  %v388_v26 = vsub.f32 %v380_v56, %v1109_v59  ;;  %v553_v22 = vsub.f32 %v1083_v60, %v1090_v62 }
 0x21f   :  { %v1117_v40 = vadd.f32 -1.0, %v389_v35  ;;  %vm495_vm11 = vweird.f32 %v1100_v51  ;;  %vm1164_vm14 = vcmp.eq.f32.partialorder %v499_v57, 8.507059e+37  ;;  %v548_v4 = vsub.f32 %v1068_v50, %v1109_v59 }
 0x220   :  { %v566_v55 = vsel %vm534_vm10, %v542_v1, %v558_v29  ;;  %v1119_v41 = vadd.f32 -1.0, %v388_v26  ;;  %v384_v1 = vadd.f32 %v1083_v60, %v1075_v53 }
 0x221   :  { %v575_v61 = vmul.f32 %v566_v55, %v62_v27  ;;  %v405_v43 = vmax.f32 %v1117_v40, 1.0  ;;  %v1152_v55 = vshra.s32 %v37_v13, 1 }
 0x222   :  { %v311_v46 = vpop.permute.xlu1 %310  ;;  %v404_v6 = vmax.f32 %v1119_v41, 1.0 }
 0x223   :  { %v1122_v48 = vpop.eup %801  ;;  %v1128_v32 = vadd.f32 %v311_v46, %v1009_v2  ;;  %585 = vadd.xlane.f32.xlu0 %v575_v61  ;;  %v413_v24 = vmul.f32 %v405_v43, %v389_v35  ;;  %v1156_v61 = vshra.s32 %v36_v12, 1  ;;  %v501_v46 = vand.u32 2147483648, %v1100_v51  ;;  %v331_v12 = vpop.permute.xlu2 %330 }
 0x224   :  { %v491_v39 = vmul.f32 %v1122_v48, %v1100_v51  ;;  %v412_v49 = vmul.f32 %v404_v6, %v388_v26  ;;  %vm496_vm13 = vweird.f32 %v1122_v48 }
 0x225   :  { %v391_v3 = vsub.f32 %v383_v14, %v1128_v32  ;;  %803 = vrcp.f32 %v413_v24  ;;  %v549_v14 = vsub.f32 %v1068_v50, %v1103_v23  ;;  %v445_v23 = vand.u32 2147483648, %v413_v24  ;;  %vm1180_vm7 = vmor %vm495_vm11, %vm496_vm13 }
 0x226   :  { %805 = vrcp.f32 %v412_v49  ;;  %v492_v56 = vsub.f32 1.0, %v491_v39  ;;  %v429_v25 = vand.u32 2147483647, %v412_v49  ;;  %v431_v57 = vand.u32 2147483648, %v412_v49 }
 0x227   :  { %v1137_v54 = vadd.f32 -1.0, %v391_v3  ;;  %v502_v19 = vor.u32 1.1754944e-38, %v501_v46  ;;  %vm439_vm8 = vweird.f32 %v413_v24  ;;  %vm425_vm9 = vweird.f32 %v412_v49 }
 0x228   :  { %v493_v35 = vmul.f32 %v1122_v48, %v492_v56  ;;  %vm430_vm4 = vcmp.eq.f32.partialorder %v429_v25, 8.507059e+37 }
 0x229   :  { %v1312_v2 = vmax.f32 %v1137_v54, 1.0 }
 0x22a   :  { %v494_v16 = vadd.f32 %v1122_v48, %v493_v35 }
 0x22b   :  { %v804_v58 = vpop.eup %803  ;;  %v1145_v27 = vmul.f32 %v1312_v2, %v391_v3  ;;  %v443_v3 = vand.u32 2147483647, %v413_v24  ;;  %v337_v35 = vpop.permute.xlu0 %336 }
 0x22c   :  { %v806_v29 = vpop.eup %805  ;;  %v435_v26 = vmul.f32 %v804_v58, %v413_v24  ;;  %vm440_vm5 = vweird.f32 %v804_v58  ;;  %v498_v51 = vsel %vm1180_vm7, %v1122_v48, %v494_v16  ;;  %vm536_vm7 = vcmp.gt.f32.partialorder %v971_v37, 0.5 }
 0x22d   :  { %v421_v39 = vmul.f32 %v806_v29, %v412_v49  ;;  %807 = vrcp.f32 %v1145_v27  ;;  %vm426_vm6 = vweird.f32 %v806_v29  ;;  %vm441_vm10 = vmor %vm439_vm8, %vm440_vm5  ;;  %vm444_vm0 = vcmp.eq.f32.partialorder %v443_v3, 8.507059e+37 }
 0x22e   :  { %v436_v13 = vsub.f32 1.0, %v435_v26  ;;  %v1174_v26 = vadd.f32 %v331_v12, %v1003_v63  ;;  %v446_v63 = vor.u32 1.1754944e-38, %v445_v23  ;;  %vm427_vm11 = vmor %vm425_vm9, %vm426_vm6  ;;  %v503_v16 = vsel %vm1164_vm14, %v502_v19, %v498_v51 }
 0x22f   :  { %v422_v56 = vsub.f32 1.0, %v421_v39  ;;  %v545_v41 = vmul.f32 %v503_v16, %v409_v47  ;;  %v551_v47 = vsub.f32 %v1073_v52, %v1128_v32  ;;  %vm535_vm14 = vcmp.gt.f32.partialorder %v962_v33, 0.5 }
 0x230   :  { %v437_v18 = vmul.f32 %v804_v58, %v436_v13  ;;  %v1320_v32 = vmax.f32 %v1137_v54, 1.0  ;;  %v1322_v37 = vsub.s32 0, %v914_v9 }
 0x231   :  { %v423_v2 = vmul.f32 %v806_v29, %v422_v56 }
 0x232   :  { %v318_v50 = vpop.permute.xlu1 %317  ;;  %v438_v39 = vadd.f32 %v804_v58, %v437_v18  ;;  %v432_v18 = vor.u32 1.1754944e-38, %v431_v57 }
 0x233   :  { %v1185_v46 = vadd.f32 %v318_v50, %v1005_v0  ;;  %v424_v13 = vadd.f32 %v806_v29, %v423_v2  ;;  %v808_v12 = vpop.eup %807  ;;  %v1195_v2 = vadd.f32 %v337_v35, %v1016_v17  ;;  %v473_v17 = vand.u32 2147483648, %v1145_v27 }
 0x234   :  { %v442_v56 = vsel %vm441_vm10, %v804_v58, %v438_v39  ;;  %v463_v3 = vmul.f32 %v808_v12, %v1145_v27 }
 0x235   :  { %v392_v24 = vsub.f32 %v384_v1, %v1185_v46  ;;  %v447_v0 = vsel %vm444_vm0, %v446_v63, %v442_v56  ;;  %v428_v49 = vsel %vm427_vm11, %v806_v29, %v424_v13  ;;  %v471_v29 = vand.u32 2147483647, %v1145_v27 }
 0x236   :  { %v541_v25 = vmul.f32 %v447_v0, %v405_v43  ;;  %v557_v23 = vmul.f32 %v549_v14, %v447_v0  ;;  %v433_v50 = vsel %vm430_vm4, %v432_v18, %v428_v49  ;;  %v464_v1 = vsub.f32 1.0, %v463_v3 }
 0x237   :  { %v1199_v59 = vadd.f32 -1.0, %v392_v24  ;;  %v540_v48 = vmul.f32 %v433_v50, %v404_v6  ;;  %v556_v58 = vmul.f32 %v548_v4, %v433_v50  ;;  %vm468_vm0 = vweird.f32 %v808_v12 }
 0x238   :  { %v565_v40 = vsel %vm533_vm12, %v541_v25, %v557_v23  ;;  %v465_v43 = vmul.f32 %v808_v12, %v464_v1  ;;  %v561_v6 = vmul.f32 %v553_v22, %v503_v16  ;;  %vm467_vm4 = vweird.f32 %v1145_v27 }
 0x239   :  { %v408_v57 = vmax.f32 %v1199_v59, 1.0  ;;  %v574_v14 = vmul.f32 %v565_v40, %v1152_v55  ;;  %v564_v19 = vsel %vm532_vm15, %v540_v48, %v556_v58  ;;  %vm469_vm12 = vmor %vm467_vm4, %vm468_vm0  ;;  %v474_v62 = vor.u32 1.1754944e-38, %v473_v17 }
 0x23a   :  { %v573_v31 = vmul.f32 %v564_v19, %v1156_v61  ;;  %v466_v39 = vadd.f32 %v808_v12, %v465_v43  ;;  %v65_v22 = vshra.s32 %v41_v20, 1  ;;  %vm472_vm13 = vcmp.eq.f32.partialorder %v471_v29, 8.507059e+37 }
 0x23b   :  { %v416_v5 = vmul.f32 %v408_v57, %v392_v24  ;;  %v1220_v4 = vpop.permute.xlu1 %377  ;;  %583 = vadd.xlane.f32.xlu1 %v574_v14  ;;  %v569_v52 = vsel %vm537_vm3, %v545_v41, %v561_v6  ;;  %v552_v16 = vsub.f32 %v1083_v60, %v1185_v46  ;;  %v1321_v1 = vsub.s32 0, %v919_v10 }
 0x23c   :  { %v386_v30 = vadd.f32 %v1220_v4, %v1075_v53  ;;  %v387_v42 = vadd.f32 %v1220_v4, %v1085_v21  ;;  %581 = vadd.xlane.f32.xlu2 %v573_v31  ;;  %v470_v55 = vsel %vm469_vm12, %v808_v12, %v466_v39  ;;  %v63_v21 = vshra.s32 %v39_v15, 1 }
 0x23d   :  { %809 = vrcp.f32 %v416_v5  ;;  %v475_v61 = vsel %vm472_vm13, %v474_v62, %v470_v55  ;;  %v578_v12 = vmul.f32 %v569_v52, %v65_v22  ;;  %v487_v24 = vand.u32 2147483648, %v416_v5 }
 0x23e   :  { %v394_v27 = vsub.f32 %v386_v30, %v1174_v26  ;;  %v395_v53 = vsub.f32 %v387_v42, %v1195_v2  ;;  %v543_v35 = vmul.f32 %v475_v61, %v1320_v32  ;;  %v559_v11 = vmul.f32 %v551_v47, %v475_v61 }
 0x23f   :  { %v485_v49 = vand.u32 2147483647, %v416_v5  ;;  %vm481_vm15 = vweird.f32 %v416_v5  ;;  %v488_v25 = vor.u32 1.1754944e-38, %v487_v24  ;;  %v64_v29 = vshra.s32 %v1321_v1, 1 }
 0x240   :  { %v1241_v20 = vadd.f32 -1.0, %v395_v53  ;;  %v1243_v63 = vadd.f32 -1.0, %v394_v27  ;;  %v567_v13 = vsel %vm535_vm14, %v543_v35, %v559_v11  ;;  %v67_v42 = vshra.s32 %v1322_v37, 1 }
 0x241   :  { %v576_v56 = vmul.f32 %v567_v13, %v63_v21  ;;  %vm486_vm6 = vcmp.eq.f32.partialorder %v485_v49, 8.507059e+37  ;;  %vm539_vm11 = vcmp.gt.f32.partialorder %v969_v36, 0.5  ;;  %v1323_v62 = vsub.s32 0, %v909_v8 }
 0x242   :  { %v411_v51 = vmax.f32 %v1241_v20, 1.0  ;;  %v410_v7 = vmax.f32 %v1243_v63, 1.0  ;;  %v555_v55 = vsub.f32 %v1220_v4, %v1195_v2 }
 0x243   :  { %v810_v15 = vpop.eup %809  ;;  %591 = vadd.xlane.f32.xlu1 %v578_v12  ;;  %v66_v47 = vshra.s32 %v1323_v62, 1 }
 0x244   :  { %v477_v33 = vmul.f32 %v810_v15, %v416_v5  ;;  %v419_v38 = vmul.f32 %v411_v51, %v395_v53  ;;  %v418_v54 = vmul.f32 %v410_v7, %v394_v27  ;;  %587 = vadd.xlane.f32.xlu2 %v576_v56  ;;  %vm482_vm3 = vweird.f32 %v810_v15 }
 0x245   :  { %vm483_vm5 = vmor %vm481_vm15, %vm482_vm3  ;;  %v554_v53 = vsub.f32 %v1220_v4, %v1174_v26  ;;  %vm538_vm3 = vcmp.gt.f32.partialorder %v964_v34, 0.5  ;;  %vm1324_vm15 = vcmask 1042434  }
 0x246   :  { %v478_v18 = vsub.f32 1.0, %v477_v33  ;;  %811 = vrcp.f32 %v419_v38  ;;  %v527_v6 = vand.u32 2147483647, %v419_v38  ;;  %v529_v5 = vand.u32 2147483648, %v419_v38 }
 0x247   :  { %813 = vrcp.f32 %v418_v54  ;;  %v515_v46 = vand.u32 2147483648, %v418_v54  ;;  %v513_v10 = vand.u32 2147483647, %v418_v54  ;;  %vm523_vm10 = vweird.f32 %v419_v38 }
 0x248   :  { %v479_v0 = vmul.f32 %v810_v15, %v478_v18  ;;  %vm509_vm4 = vweird.f32 %v418_v54  ;;  %vm528_vm12 = vcmp.eq.f32.partialorder %v527_v6, 8.507059e+37 }
 0x249   :  { %v516_v9 = vor.u32 1.1754944e-38, %v515_v46  ;;  %vm514_vm14 = vcmp.eq.f32.partialorder %v513_v10, 8.507059e+37 }
 0x24a   :  { %v480_v3 = vadd.f32 %v810_v15, %v479_v0 }
 0x24c   :  { %v812_v23 = vpop.eup %811  ;;  %v484_v50 = vsel %vm483_vm5, %v810_v15, %v480_v3  ;;  %vm1325_vm5 = vcmask 1043459  }
 0x24d   :  { %v814_v48 = vpop.eup %813  ;;  %v489_v58 = vsel %vm486_vm6, %v488_v25, %v484_v50  ;;  %v519_v17 = vmul.f32 %v812_v23, %v419_v38  ;;  %vm524_vm8 = vweird.f32 %v812_v23  ;;  %vm621_vm6 = vcmask 125952  }
 0x24e   :  { %v544_v40 = vmul.f32 %v489_v58, %v408_v57  ;;  %v560_v43 = vmul.f32 %v552_v16, %v489_v58  ;;  %v505_v14 = vmul.f32 %v814_v48, %v418_v54  ;;  %vm510_vm9 = vweird.f32 %v814_v48  ;;  %vm525_vm0 = vmor %vm523_vm10, %vm524_vm8 }
 0x24f   :  { %v520_v19 = vsub.f32 1.0, %v519_v17  ;;  %v530_v57 = vor.u32 1.1754944e-38, %v529_v5  ;;  %vm511_vm13 = vmor %vm509_vm4, %vm510_vm9 }
 0x250   :  { %v568_v41 = vsel %vm536_vm7, %v544_v40, %v560_v43  ;;  %v506_v31 = vsub.f32 1.0, %v505_v14  ;;  %v572_v43 = vld [vmem:[#allocation3] sm:$0xf] }
 0x251   :  { %v577_v39 = vmul.f32 %v568_v41, %v64_v29  ;;  %v521_v60 = vmul.f32 %v812_v23, %v520_v19  ;;  %v630_v29 = vsel %vm621_vm6, %v1062_v28, 0.0  ;;  %v628_v41 = vld [vmem:[#allocation2] sm:$0xf] }
 0x252   :  { %v507_v30 = vmul.f32 %v814_v48, %v506_v31 }
 0x253   :  { %589 = vadd.xlane.f32.xlu2 %v577_v39  ;;  %v522_v59 = vadd.f32 %v812_v23, %v521_v60 }
 0x254   :  { %v508_v22 = vadd.f32 %v814_v48, %v507_v30 }
 0x255   :  { %v526_v27 = vsel %vm525_vm0, %v812_v23, %v522_v59 }
 0x256   :  { %v531_v61 = vsel %vm528_vm12, %v530_v57, %v526_v27  ;;  %v512_v21 = vsel %vm511_vm13, %v814_v48, %v508_v22  ;;  %vm684_vm12 = vcmask 0  }
 0x257   :  { %v547_v8 = vmul.f32 %v531_v61, %v411_v51  ;;  %v563_v52 = vmul.f32 %v555_v55, %v531_v61  ;;  %v517_v32 = vsel %vm514_vm14, %v516_v9, %v512_v21 }
 0x258   :  { %v546_v2 = vmul.f32 %v517_v32, %v410_v7  ;;  %v562_v35 = vmul.f32 %v554_v53, %v517_v32 }
 0x259   :  { %v571_v11 = vsel %vm539_vm11, %v547_v8, %v563_v52 }
 0x25a   :  { %v580_v13 = vmul.f32 %v571_v11, %v67_v42  ;;  %v570_v12 = vsel %vm538_vm3, %v546_v2, %v562_v35 }
 0x25b   :  { %v579_v26 = vmul.f32 %v570_v12, %v66_v47 }
 0x25c   :  { %595 = vadd.xlane.f32.xlu0 %v580_v13 }
 0x25d   :  { %593 = vadd.xlane.f32.xlu2 %v579_v26 }
 0x296   :  { %v586_v56 = vpop.xlane.xlu0 %585 }
 0x297   :  { %v608_v7 = vperm.slane %v586_v56, %v1042_v44 }
 0x2ae   :  { %v584_v20 = vpop.xlane.xlu1 %583 }
 0x2af   :  { %v582_v4 = vpop.xlane.xlu2 %581  ;;  %v606_v36 = vperm.slane %v584_v20, %v1045_v45 }
 0x2b0   :  { %v605_v38 = vperm.slane %v582_v4, %v1042_v44 }
 0x2b2   :  { %v607_v25 = vsel %vm246_vm1, %v606_v36, %v605_v38 }
 0x2b6   :  { %v592_v33 = vpop.xlane.xlu1 %591 }
 0x2b7   :  { %v588_v15 = vpop.xlane.xlu2 %587  ;;  %v612_v54 = vperm.slane %v592_v33, %v1045_v45 }
 0x2b8   :  { %v609_v34 = vperm.slane %v588_v15, %v1045_v45 }
 0x2ba   :  { %v610_v18 = vsel %vm246_vm1, %v609_v34, %v608_v7 }
 0x2bb   :  { %v617_v50 = vsel %vm257_vm2, %v610_v18, %v607_v25  ;;  %vm1327_vm2 = vcmask 3072  }
 0x2c6   :  { %v590_v51 = vpop.xlane.xlu2 %589 }
 0x2c7   :  { %v611_v63 = vperm.slane %v590_v51, %v1042_v44 }
 0x2c9   :  { %v613_v0 = vsel %vm246_vm1, %v612_v54, %v611_v63 }
 0x2ca   :  { %v618_v48 = vsel %vm1324_vm15, %v613_v0, %v617_v50 }
 0x2cf   :  { %v596_v24 = vpop.xlane.xlu0 %595 }
 0x2d0   :  { %v615_v49 = vperm.slane %v596_v24, %v1045_v45  ;;  %v594_v3 = vpop.xlane.xlu2 %593  ;;  %v638_v45 = vld [vmem:[%s1302_s0] sm:$0xf] }
 0x2d1   :  { %v614_v23 = vperm.slane %v594_v3, %v1042_v44  ;;  %vm639_vm7 = vcmp.gt.f32.partialorder %v638_v45, 0.0  ;;  %v1326_v44 = vmov 0.0  }
 0x2d2   :  { %v743_v17 = vsel %vm639_vm7, 1.0, %v1326_v44 }
 0x2d3   :  { %v616_v16 = vsel %vm246_vm1, %v615_v49, %v614_v23  ;;  %v655_v40 = vsel %vm1327_vm2, %v743_v17, 0.0  ;;  %vm1328_vm1 = vmmov %vm1327_vm2 }
 0x2d4   :  { %v619_v58 = vsel %vm1325_vm5, %v616_v16, %v618_v48  ;;  %656 = vadd.xlane.f32.xlu0 %v655_v40  ;;  %vm1329_vm8 = vmmov %vm1328_vm1 }
 0x2d5   :  { %v622_v1 = vsel %vm621_vm6, %v619_v58, 0.0  ;;  %vm1330_vm9 = vmmov %vm1328_vm1 }
 0x2d6   :  { %623 = vadd.xlane.f32.xlu1 %v622_v1 }
 0x2de   :  { %631 = vadd.xlane.f32.xlu1 %v630_v29 }
 0x347   :  { %v657_v60 = vpop.xlane.xlu0 %656 }
 0x348   :  { %v658_v46 = vrot.slane %v657_v60, 4 }
 0x349   :  { %v624_v14 = vpop.xlane.xlu1 %623 }
 0x34a   :  { %v625_v19 = vadd.f32 %v624_v14, %v572_v43  ;;  %v659_v30 = vadd.f32 %v658_v46, %v657_v60 }
 0x34c   :  { %627 = vst.msk [vmem:[#allocation3] sm:$0xf] %vm1328_vm1, %v625_v19  ;;  %v660_v10 = vrot.slane %v659_v30, 2 }
 0x34e   :  { %v661_v57 = vadd.f32 %v660_v10, %v659_v30 }
 0x350   :  { %v662_v22 = vrot.slane %v661_v57, 1 }
 0x351   :  { %v632_v6 = vpop.xlane.xlu1 %631 }
 0x352   :  { %v633_v5 = vadd.f32 %v632_v6, %v628_v41  ;;  %v663_v9 = vadd.f32 %v662_v22, %v661_v57 }
 0x353   :  { %v640_v28 = vld [vmem:[#allocation3] sm:$0xf] }
 0x354   :  { %634 = vst.msk [vmem:[#allocation2] sm:$0xf] %vm1329_vm8, %v633_v5  ;;  %v641_v31 = vsel %vm639_vm7, %v640_v28, 0.0 }
 0x355   :  { %v642_v39 = vsel %vm1330_vm9, %v641_v31, 0.0 }
 0x356   :  { %643 = vadd.xlane.f32.xlu2 %v642_v39 }
 0x3c9   :  { %v644_v37 = vpop.xlane.xlu2 %643 }
 0x3ca   :  { %v645_v42 = vrot.slane %v644_v37, 4 }
 0x3cc   :  { %v646_v59 = vadd.f32 %v645_v42, %v644_v37 }
 0x3ce   :  { %v647_v62 = vrot.slane %v646_v59, 2 }
 0x3d0   :  { %v648_v47 = vadd.f32 %v647_v62, %v646_v59 }
 0x3d2   :  { %v649_v55 = vrot.slane %v648_v47, 1 }
 0x3d4   :  { %v650_v27 = vadd.f32 %v649_v55, %v648_v47 }
 0x3d6   :  { %776 = vpush %v650_v27 }
 0x3d7   :  { %778 = vpush %v663_v9 }
 0x407   :  { %s777_s0 = spop %776 }
 0x408   :  { %s779_s8 = spop %778  ;;  %v652_v26 = vstv %s777_s0 }
 0x409   :  { %v665_v53 = vstv %s779_s8 }
 0x40a   :  { %v667_v61 = vmax.f32 %v665_v53, 1.0  ;;  %vm666_vm13 = vcmp.gt.f32.partialorder %v665_v53, 0.0 }
 0x40c   :  { %815 = vrcp.f32 %v667_v61  ;;  %v679_v32 = vand.u32 2147483648, %v667_v61  ;;  %v677_v35 = vand.u32 2147483647, %v667_v61  ;;  %vm673_vm11 = vweird.f32 %v667_v61 }
 0x40e   :  { %v680_v13 = vor.u32 1.1754944e-38, %v679_v32  ;;  %vm678_vm4 = vcmp.eq.f32.partialorder %v677_v35, 8.507059e+37 }
 0x412   :  { %v816_v21 = vpop.eup %815 }
 0x413   :  { %v669_v8 = vmul.f32 %v816_v21, %v667_v61  ;;  %vm674_vm10 = vweird.f32 %v816_v21 }
 0x414   :  { %vm675_vm0 = vmor %vm673_vm11, %vm674_vm10 }
 0x415   :  { %v670_v52 = vsub.f32 1.0, %v669_v8 }
 0x417   :  { %v671_v2 = vmul.f32 %v816_v21, %v670_v52 }
 0x419   :  { %v672_v11 = vadd.f32 %v816_v21, %v671_v2 }
 0x41b   :  { %v676_v12 = vsel %vm675_vm0, %v816_v21, %v672_v11 }
 0x41c   :  { %v681_v4 = vsel %vm678_vm4, %v680_v13, %v676_v12 }
 0x41d   :  { %v682_v15 = vmul.f32 %v681_v4, %v652_v26 }
 0x41f   :  { %v683_v20 = vsel %vm666_vm13, %v682_v15, 0.0 }
 0x420   :  { %685 = vst.msk [vmem:[#allocation4] sm:$0x1] %vm684_vm12, %v683_v20 }
 0x421   :  { %696 = dma.vmem_to_hbm [thread:$0]  %s692_s10, 16, %s694_s13, [#allocation5]  }
 0x422   :  { %841 = dma.done.wait [#allocation5], 16  }
 0x423   :  { %842 = vsyncadd [#allocation5], 4294967280 }
 0x424   :  { %701 = vsyncpa [#allocation5], 1 }

</bundles_post_ra>
